<compile_context>
chip_gen: v6e
topology: v6e:2x2x1
jax: 0.10.0
libtpu: 0.0.40
codegen_flags: <defaults>
</compile_context>

<pallas_src>
import functools
import math

import jax
import jax.numpy as jnp
from jax.experimental import pallas as pl
from jax.experimental.pallas import tpu as pltpu

# ----------------------------- config -----------------------------
BATCH = 2
SEQ = 8
HIDDEN = 32
NUM_HEADS = 4
HEAD_DIM = HIDDEN // NUM_HEADS
INTERMEDIATE = 64
NUM_LAYERS = 2
LN_EPS = 1e-12


# ----------------------------- fused encoder kernel -----------------------------
def _layernorm(x, gamma, beta, eps):
    mu = jnp.mean(x, axis=-1, keepdims=True)
    var = jnp.mean(jnp.square(x - mu), axis=-1, keepdims=True)
    return (x - mu) * jax.lax.rsqrt(var + eps) * gamma + beta


def _encoder_kernel(
    x_ref, mask_ref,
    qkv_w_ref, qkv_b_ref,
    ao_w_ref, ao_b_ref, ao_g_ref, ao_be_ref,
    i_w_ref, i_b_ref,
    o_w_ref, o_b_ref, o_g_ref, o_be_ref,
    out_ref,
    *, num_layers, seq, num_heads, head_dim, eps,
):
    hidden = num_heads * head_dim
    inv_sqrt2 = 0.7071067811865476

    h = x_ref[0].astype(jnp.float32)        # (S, H) hidden state of this batch elem
    neg_mask = mask_ref[...]                # (1, 1, S) additive key mask

    # Static layer loop: weights resident in VMEM, zero per-layer grid overhead.
    for l in range(num_layers):
        # ---------- head-major QKV projection ----------
        # Weights are pre-arranged head-major as (3*nh, H, D); activations are
        # broadcast along the head axis so every dot below is a plain
        # leading-batch batched matmul (no lane slices, no transposes).
        w = qkv_w_ref[l]                    # (3*nh, H, D)
        b = qkv_b_ref[l]                    # (3*nh, 1, D)
        x_b = jnp.broadcast_to(h[None], (num_heads, seq, hidden))   # (nh, S, H)
        q = jnp.einsum("hsk,hkd->hsd", x_b, w[0:num_heads],
                       preferred_element_type=jnp.float32) + b[0:num_heads]
        k = jnp.einsum("hsk,hkd->hsd", x_b, w[num_heads:2 * num_heads],
                       preferred_element_type=jnp.float32) + b[num_heads:2 * num_heads]
        v = jnp.einsum("hsk,hkd->hsd", x_b, w[2 * num_heads:3 * num_heads],
                       preferred_element_type=jnp.float32) + b[2 * num_heads:3 * num_heads]

        # ---------- all-head attention (scale folded into Q weights) ----------
        s = jnp.einsum("hqd,hkd->hqk", q, k,
                       preferred_element_type=jnp.float32)           # (nh, S, S)
        s = s + neg_mask                                             # mask added once
        m = jnp.max(s, axis=-1, keepdims=True)
        e = jnp.exp(s - m)
        # NOTE: pl.reciprocal(approx=True) would push the divide to the EUP slot
        # but perturbs numerics; kept exact to preserve the 1e-4 reference check.
        p = e * (1.0 / jnp.sum(e, axis=-1, keepdims=True))
        ctx = jnp.einsum("hqk,hkd->hqd", p, v,
                         preferred_element_type=jnp.float32)         # (nh, S, D)

        # ---------- context -> hidden projection fused over heads ----------
        # concat_h(ctx_h) @ W_ao == sum_h ctx_h @ W_ao[h]   (no lane concat)
        attn = jnp.einsum("hqd,hdo->hqo", ctx, ao_w_ref[l],
                          preferred_element_type=jnp.float32)        # (nh, S, H)
        attn = jnp.sum(attn, axis=0) + ao_b_ref[l]                   # (S, H)

        # ---------- SelfOutput: residual + LayerNorm ----------
        h1 = _layernorm(attn + h, ao_g_ref[l], ao_be_ref[l], eps)

        # ---------- Intermediate (exact erf GELU) + Output ----------
        inter = jnp.dot(h1, i_w_ref[l],
                        preferred_element_type=jnp.float32) + i_b_ref[l]
        inter = 0.5 * inter * (1.0 + jax.lax.erf(inter * inv_sqrt2))
        ffn = jnp.dot(inter, o_w_ref[l],
                      preferred_element_type=jnp.float32) + o_b_ref[l]
        h = _layernorm(ffn + h1, o_g_ref[l], o_be_ref[l], eps)

    # Single store: final hidden state only.
    out_ref[0] = h.astype(out_ref.dtype)


def splicebert_encoder(hidden_states, ext_mask, stacked):
    """hidden_states: (B, S, H); ext_mask: (B, 1, 1, S) additive float mask."""
    B, S, H = hidden_states.shape
    L, three_nh, _, D = stacked["qkv_w"].shape
    nh = three_nh // 3

    mask3 = ext_mask.reshape(B, 1, S).astype(jnp.float32)

    def resident(arr):                      # whole array, fetched once, VMEM-resident
        n = arr.ndim
        return pl.BlockSpec(arr.shape, lambda b, _n=n: (0,) * _n)

    kernel = functools.partial(
        _encoder_kernel, num_layers=L, seq=S,
        num_heads=nh, head_dim=D, eps=LN_EPS)

    out = pl.pallas_call(
        kernel,
        out_shape=jax.ShapeDtypeStruct((B, S, H), hidden_states.dtype),
        grid=(B,),
        in_specs=[
            pl.BlockSpec((1, S, H), lambda b: (b, 0, 0)),   # hidden states (per batch)
            pl.BlockSpec((1, 1, S), lambda b: (b, 0, 0)),   # additive mask (per batch)
            resident(stacked["qkv_w"]), resident(stacked["qkv_b"]),
            resident(stacked["ao_w"]), resident(stacked["ao_b"]),
            resident(stacked["ao_ln_g"]), resident(stacked["ao_ln_b"]),
            resident(stacked["i_w"]), resident(stacked["i_b"]),
            resident(stacked["o_w"]), resident(stacked["o_b"]),
            resident(stacked["o_ln_g"]), resident(stacked["o_ln_b"]),
        ],
        out_specs=pl.BlockSpec((1, S, H), lambda b: (b, 0, 0)),
        compiler_params=pltpu.CompilerParams(
            dimension_semantics=("parallel",)),   # v7x: one batch elem per TensorCore
    )(hidden_states, mask3,
      stacked["qkv_w"], stacked["qkv_b"],
      stacked["ao_w"], stacked["ao_b"], stacked["ao_ln_g"], stacked["ao_ln_b"],
      stacked["i_w"], stacked["i_b"],
      stacked["o_w"], stacked["o_b"], stacked["o_ln_g"], stacked["o_ln_b"])

    return out


# ----------------------------- params -----------------------------
def init_layer_params(key):
    ks = jax.random.split(key, 6)
    std = 0.02

    def w(k, shape):
        return (std * jax.random.normal(k, shape)).astype(jnp.float32)

    return {
        "q_w": w(ks[0], (HIDDEN, HIDDEN)), "q_b": jnp.zeros((HIDDEN,), jnp.float32),
        "k_w": w(ks[1], (HIDDEN, HIDDEN)), "k_b": jnp.zeros((HIDDEN,), jnp.float32),
        "v_w": w(ks[2], (HIDDEN, HIDDEN)), "v_b": jnp.zeros((HIDDEN,), jnp.float32),
        "ao_w": w(ks[3], (HIDDEN, HIDDEN)), "ao_b": jnp.zeros((HIDDEN,), jnp.float32),
        "ao_ln_g": jnp.ones((HIDDEN,), jnp.float32),
        "ao_ln_b": jnp.zeros((HIDDEN,), jnp.float32),
        "i_w": w(ks[4], (HIDDEN, INTERMEDIATE)), "i_b": jnp.zeros((INTERMEDIATE,), jnp.float32),
        "o_w": w(ks[5], (INTERMEDIATE, HIDDEN)), "o_b": jnp.zeros((HIDDEN,), jnp.float32),
        "o_ln_g": jnp.ones((HIDDEN,), jnp.float32),
        "o_ln_b": jnp.zeros((HIDDEN,), jnp.float32),
    }


def stack_layer_params(params):
    """Stack per-layer params (leading layer axis), head-major QKV weights,
    with the 1/sqrt(head_dim) attention scale pre-folded into Q."""
    scale = 1.0 / math.sqrt(HEAD_DIM)

    def per_head_w(w):   # (H, H) -> (nh, H, D); head h == columns h*D:(h+1)*D
        return w.reshape(HIDDEN, NUM_HEADS, HEAD_DIM).transpose(1, 0, 2)

    def per_head_b(b):   # (H,) -> (nh, 1, D)
        return b.reshape(NUM_HEADS, 1, HEAD_DIM)

    qkv_w, qkv_b = [], []
    for p in params:
        qkv_w.append(jnp.concatenate(
            [per_head_w(p["q_w"] * scale), per_head_w(p["k_w"]), per_head_w(p["v_w"])],
            axis=0))                                                # (3*nh, H, D)
        qkv_b.append(jnp.concatenate(
            [per_head_b(p["q_b"] * scale), per_head_b(p["k_b"]), per_head_b(p["v_b"])],
            axis=0))                                                # (3*nh, 1, D)

    def mat(key):
        return jnp.stack([p[key] for p in params], axis=0)

    def row(key):
        return jnp.stack([p[key][None, :] for p in params], axis=0)

    # ao_w rows are ordered [head0 dims..., head1 dims...]: reshape to (nh, D, H).
    ao_w = jnp.stack([p["ao_w"].reshape(NUM_HEADS, HEAD_DIM, HIDDEN)
                      for p in params], axis=0)                     # (L, nh, D, H)

    return {
        "qkv_w": jnp.stack(qkv_w, axis=0),   # (L, 3*nh, H, D)
        "qkv_b": jnp.stack(qkv_b, axis=0),   # (L, 3*nh, 1, D)
        "ao_w": ao_w, "ao_b": row("ao_b"),
        "ao_ln_g": row("ao_ln_g"), "ao_ln_b": row("ao_ln_b"),
        "i_w": mat("i_w"), "i_b": row("i_b"),
        "o_w": mat("o_w"), "o_b": row("o_b"),
        "o_ln_g": row("o_ln_g"), "o_ln_b": row("o_ln_b"),
    }


# ----------------------------- pure-JAX reference -----------------------------
def reference_encoder(hidden_states, ext_mask, params):
    h = hidden_states
    for p in params:
        B, S, H = h.shape
        x = h.reshape(B * S, H)
        q = x @ p["q_w"] + p["q_b"]
        k = x @ p["k_w"] + p["k_b"]
        v = x @ p["v_w"] + p["v_b"]
        sh = lambda t: t.reshape(B, S, NUM_HEADS, HEAD_DIM).transpose(0, 2, 1, 3)
        qh, kh, vh = sh(q), sh(k), sh(v)
        scores = jnp.einsum("bhqd,bhkd->bhqk", qh, kh) / math.sqrt(HEAD_DIM)
        scores = scores + ext_mask
        probs = jax.nn.softmax(scores, axis=-1)
        ctx = jnp.einsum("bhqk,bhkd->bhqd", probs, vh)
        ctx = ctx.transpose(0, 2, 1, 3).reshape(B * S, H)
        ao = ctx @ p["ao_w"] + p["ao_b"]
        hh = ao + x
        mu = hh.mean(-1, keepdims=True)
        var = ((hh - mu) ** 2).mean(-1, keepdims=True)
        ao = (hh - mu) / jnp.sqrt(var + LN_EPS) * p["ao_ln_g"] + p["ao_ln_b"]
        inter = jax.nn.gelu(ao @ p["i_w"] + p["i_b"], approximate=False)
        out = inter @ p["o_w"] + p["o_b"]
        hh = out + ao
        mu = hh.mean(-1, keepdims=True)
        var = ((hh - mu) ** 2).mean(-1, keepdims=True)
        out = (hh - mu) / jnp.sqrt(var + LN_EPS) * p["o_ln_g"] + p["o_ln_b"]
        h = out.reshape(B, S, H)
    return h


# ----------------------------- main -----------------------------
if __name__ == "__main__":
    key = jax.random.PRNGKey(0)
    k_in, k_params = jax.random.split(key)

    hidden_states = jax.random.normal(k_in, (BATCH, SEQ, HIDDEN), jnp.float32)

    # attention mask: (B, S) keep-mask -> HF-style additive extended mask (B,1,1,S)
    attn_mask = jnp.ones((BATCH, SEQ), jnp.float32)
    attn_mask = attn_mask.at[1, SEQ - 2:].set(0.0)   # pad last 2 tokens of batch 1
    ext_mask = (1.0 - attn_mask)[:, None, None, :] * jnp.float32(-1e9)

    layer_keys = jax.random.split(k_params, NUM_LAYERS)
    params = [init_layer_params(layer_keys[i]) for i in range(NUM_LAYERS)]
    stacked = stack_layer_params(params)

    out = splicebert_encoder(hidden_states, ext_mask, stacked)
    out = jax.block_until_ready(out)

    ref = reference_encoder(hidden_states, ext_mask, params)
    assert out.shape == (BATCH, SEQ, HIDDEN)
    assert jnp.allclose(out, ref, rtol=1e-4, atol=1e-4), "mismatch vs reference"

    print("KERNEL_OK")
</pallas_src>

<mosaic_0001>
module attributes {stable_mosaic.version = 11 : i64} {
  func.func @_encoder_kernel(%arg0: i32, %arg1: memref<1x8x32xf32, #tpu.memory_space<vmem>>, %arg2: memref<1x1x8xf32, #tpu.memory_space<vmem>>, %arg3: memref<2x12x32x8xf32, #tpu.memory_space<vmem>>, %arg4: memref<2x12x1x8xf32, #tpu.memory_space<vmem>>, %arg5: memref<2x4x8x32xf32, #tpu.memory_space<vmem>>, %arg6: memref<2x1x32xf32, #tpu.memory_space<vmem>>, %arg7: memref<2x1x32xf32, #tpu.memory_space<vmem>>, %arg8: memref<2x1x32xf32, #tpu.memory_space<vmem>>, %arg9: memref<2x32x64xf32, #tpu.memory_space<vmem>>, %arg10: memref<2x1x64xf32, #tpu.memory_space<vmem>>, %arg11: memref<2x64x32xf32, #tpu.memory_space<vmem>>, %arg12: memref<2x1x32xf32, #tpu.memory_space<vmem>>, %arg13: memref<2x1x32xf32, #tpu.memory_space<vmem>>, %arg14: memref<2x1x32xf32, #tpu.memory_space<vmem>>, %arg15: memref<1x8x32xf32, #tpu.memory_space<vmem>>) attributes {dimension_semantics = [#tpu.dimension_semantics<parallel>], iteration_bounds = array<i64: 2>, scalar_prefetch = 0 : i64, scratch_operands = 0 : i64, tpu.core_type = #tpu.core_type<tc>, window_params = [{transform_indices = @transform_0, window_bounds = array<i64: 1, 8, 32>}, {transform_indices = @transform_1, window_bounds = array<i64: 1, 1, 8>}, {pipeline_mode = #tpu.pipeline_mode<synchronous>, transform_indices = @transform_2, window_bounds = array<i64: 2, 12, 32, 8>}, {pipeline_mode = #tpu.pipeline_mode<synchronous>, transform_indices = @transform_3, window_bounds = array<i64: 2, 12, 1, 8>}, {pipeline_mode = #tpu.pipeline_mode<synchronous>, transform_indices = @transform_4, window_bounds = array<i64: 2, 4, 8, 32>}, {pipeline_mode = #tpu.pipeline_mode<synchronous>, transform_indices = @transform_5, window_bounds = array<i64: 2, 1, 32>}, {pipeline_mode = #tpu.pipeline_mode<synchronous>, transform_indices = @transform_6, window_bounds = array<i64: 2, 1, 32>}, {pipeline_mode = #tpu.pipeline_mode<synchronous>, transform_indices = @transform_7, window_bounds = array<i64: 2, 1, 32>}, {pipeline_mode = #tpu.pipeline_mode<synchronous>, transform_indices = @transform_8, window_bounds = array<i64: 2, 32, 64>}, {pipeline_mode = #tpu.pipeline_mode<synchronous>, transform_indices = @transform_9, window_bounds = array<i64: 2, 1, 64>}, {pipeline_mode = #tpu.pipeline_mode<synchronous>, transform_indices = @transform_10, window_bounds = array<i64: 2, 64, 32>}, {pipeline_mode = #tpu.pipeline_mode<synchronous>, transform_indices = @transform_11, window_bounds = array<i64: 2, 1, 32>}, {pipeline_mode = #tpu.pipeline_mode<synchronous>, transform_indices = @transform_12, window_bounds = array<i64: 2, 1, 32>}, {pipeline_mode = #tpu.pipeline_mode<synchronous>, transform_indices = @transform_13, window_bounds = array<i64: 2, 1, 32>}, {transform_indices = @transform_14, window_bounds = array<i64: 1, 8, 32>}]} {
    %c0 = arith.constant 0 : index
    %c0_0 = arith.constant 0 : index
    %c0_1 = arith.constant 0 : index
    %0 = vector.load %arg1[%c0, %c0_0, %c0_1] : memref<1x8x32xf32, #tpu.memory_space<vmem>>, vector<1x8x32xf32>
    %1 = vector.shape_cast %0 : vector<1x8x32xf32> to vector<8x32xf32>
    %c0_2 = arith.constant 0 : index
    %c0_3 = arith.constant 0 : index
    %c0_4 = arith.constant 0 : index
    %2 = vector.load %arg2[%c0_2, %c0_3, %c0_4] : memref<1x1x8xf32, #tpu.memory_space<vmem>>, vector<1x1x8xf32>
    %c0_5 = arith.constant 0 : index
    %c0_6 = arith.constant 0 : index
    %c0_7 = arith.constant 0 : index
    %c0_8 = arith.constant 0 : index
    %3 = vector.load %arg3[%c0_5, %c0_6, %c0_7, %c0_8] : memref<2x12x32x8xf32, #tpu.memory_space<vmem>>, vector<1x12x32x8xf32>
    %4 = vector.shape_cast %3 : vector<1x12x32x8xf32> to vector<12x32x8xf32>
    %c0_9 = arith.constant 0 : index
    %c0_10 = arith.constant 0 : index
    %c0_11 = arith.constant 0 : index
    %c0_12 = arith.constant 0 : index
    %5 = vector.load %arg4[%c0_9, %c0_10, %c0_11, %c0_12] : memref<2x12x1x8xf32, #tpu.memory_space<vmem>>, vector<1x12x1x8xf32>
    %6 = vector.shape_cast %5 : vector<1x12x1x8xf32> to vector<12x1x8xf32>
    %7 = vector.shape_cast %1 : vector<8x32xf32> to vector<1x8x32xf32>
    %8 = vector.shape_cast %7 : vector<1x8x32xf32> to vector<1x8x32xf32>
    %9 = vector.broadcast %8 : vector<1x8x32xf32> to vector<4x8x32xf32>
    %10 = vector.extract_strided_slice %4 {offsets = [0, 0, 0], sizes = [4, 32, 8], strides = [1, 1, 1]} : vector<12x32x8xf32> to vector<4x32x8xf32>
    "tpu.trace_start"() <{level = 10 : i32, message = "hsk,hkd->hsd"}> : () -> ()
    %cst = arith.constant dense<0.000000e+00> : vector<4x8x8xf32>
    %11 = tpu.matmul %9, %10, %cst {dimension_numbers = #tpu.dot_dimension_numbers<[2], [1], [1], [2], [0, 0, 0, 1, 1, 2], [0], [0]>} : vector<4x8x32xf32>, vector<4x32x8xf32>, vector<4x8x8xf32> -> vector<4x8x8xf32>
    "tpu.trace_stop"() : () -> ()
    %12 = vector.extract_strided_slice %6 {offsets = [0, 0, 0], sizes = [4, 1, 8], strides = [1, 1, 1]} : vector<12x1x8xf32> to vector<4x1x8xf32>
    %13 = vector.broadcast %12 : vector<4x1x8xf32> to vector<4x8x8xf32>
    %14 = arith.addf %11, %13 : vector<4x8x8xf32>
    %15 = vector.extract_strided_slice %4 {offsets = [4, 0, 0], sizes = [4, 32, 8], strides = [1, 1, 1]} : vector<12x32x8xf32> to vector<4x32x8xf32>
    "tpu.trace_start"() <{level = 10 : i32, message = "hsk,hkd->hsd"}> : () -> ()
    %cst_13 = arith.constant dense<0.000000e+00> : vector<4x8x8xf32>
    %16 = tpu.matmul %9, %15, %cst_13 {dimension_numbers = #tpu.dot_dimension_numbers<[2], [1], [1], [2], [0, 0, 0, 1, 1, 2], [0], [0]>} : vector<4x8x32xf32>, vector<4x32x8xf32>, vector<4x8x8xf32> -> vector<4x8x8xf32>
    "tpu.trace_stop"() : () -> ()
    %17 = vector.extract_strided_slice %6 {offsets = [4, 0, 0], sizes = [4, 1, 8], strides = [1, 1, 1]} : vector<12x1x8xf32> to vector<4x1x8xf32>
    %18 = vector.broadcast %17 : vector<4x1x8xf32> to vector<4x8x8xf32>
    %19 = arith.addf %16, %18 : vector<4x8x8xf32>
    %20 = vector.extract_strided_slice %4 {offsets = [8, 0, 0], sizes = [4, 32, 8], strides = [1, 1, 1]} : vector<12x32x8xf32> to vector<4x32x8xf32>
    "tpu.trace_start"() <{level = 10 : i32, message = "hsk,hkd->hsd"}> : () -> ()
    %cst_14 = arith.constant dense<0.000000e+00> : vector<4x8x8xf32>
    %21 = tpu.matmul %9, %20, %cst_14 {dimension_numbers = #tpu.dot_dimension_numbers<[2], [1], [1], [2], [0, 0, 0, 1, 1, 2], [0], [0]>} : vector<4x8x32xf32>, vector<4x32x8xf32>, vector<4x8x8xf32> -> vector<4x8x8xf32>
    "tpu.trace_stop"() : () -> ()
    %22 = vector.extract_strided_slice %6 {offsets = [8, 0, 0], sizes = [4, 1, 8], strides = [1, 1, 1]} : vector<12x1x8xf32> to vector<4x1x8xf32>
    %23 = vector.broadcast %22 : vector<4x1x8xf32> to vector<4x8x8xf32>
    %24 = arith.addf %21, %23 : vector<4x8x8xf32>
    "tpu.trace_start"() <{level = 10 : i32, message = "hqd,hkd->hqk"}> : () -> ()
    %cst_15 = arith.constant dense<0.000000e+00> : vector<4x8x8xf32>
    %25 = tpu.matmul %14, %19, %cst_15 {dimension_numbers = #tpu.dot_dimension_numbers<[2], [2], [1], [1], [0, 0, 0, 1, 1, 1], [0], [0]>} : vector<4x8x8xf32>, vector<4x8x8xf32>, vector<4x8x8xf32> -> vector<4x8x8xf32>
    "tpu.trace_stop"() : () -> ()
    %26 = vector.broadcast %2 : vector<1x1x8xf32> to vector<4x8x8xf32>
    %27 = arith.addf %25, %26 : vector<4x8x8xf32>
    %cst_16 = arith.constant dense<0xFF800000> : vector<4x8xf32>
    %28 = vector.multi_reduction <maximumf>, %27, %cst_16 [2] : vector<4x8x8xf32> to vector<4x8xf32>
    %29 = vector.shape_cast %28 : vector<4x8xf32> to vector<4x8x1xf32>
    %30 = vector.broadcast %29 : vector<4x8x1xf32> to vector<4x8x8xf32>
    %31 = arith.subf %27, %30 : vector<4x8x8xf32>
    %32 = math.exp %31 : vector<4x8x8xf32>
    %cst_17 = arith.constant dense<0.000000e+00> : vector<4x8xf32>
    %33 = vector.multi_reduction <add>, %32, %cst_17 [2] : vector<4x8x8xf32> to vector<4x8xf32>
    %34 = vector.shape_cast %33 : vector<4x8xf32> to vector<4x8x1xf32>
    %cst_18 = arith.constant 1.000000e+00 : f32
    %35 = vector.broadcast %cst_18 : f32 to vector<4x8x1xf32>
    %36 = arith.divf %35, %34 : vector<4x8x1xf32>
    %37 = vector.broadcast %36 : vector<4x8x1xf32> to vector<4x8x8xf32>
    %38 = arith.mulf %32, %37 : vector<4x8x8xf32>
    "tpu.trace_start"() <{level = 10 : i32, message = "hqk,hkd->hqd"}> : () -> ()
    %cst_19 = arith.constant dense<0.000000e+00> : vector<4x8x8xf32>
    %39 = tpu.matmul %38, %24, %cst_19 {dimension_numbers = #tpu.dot_dimension_numbers<[2], [1], [1], [2], [0, 0, 0, 1, 1, 2], [0], [0]>} : vector<4x8x8xf32>, vector<4x8x8xf32>, vector<4x8x8xf32> -> vector<4x8x8xf32>
    "tpu.trace_stop"() : () -> ()
    %c0_20 = arith.constant 0 : index
    %c0_21 = arith.constant 0 : index
    %c0_22 = arith.constant 0 : index
    %c0_23 = arith.constant 0 : index
    %40 = vector.load %arg5[%c0_20, %c0_21, %c0_22, %c0_23] : memref<2x4x8x32xf32, #tpu.memory_space<vmem>>, vector<1x4x8x32xf32>
    %41 = vector.shape_cast %40 : vector<1x4x8x32xf32> to vector<4x8x32xf32>
    "tpu.trace_start"() <{level = 10 : i32, message = "hqd,hdo->hqo"}> : () -> ()
    %cst_24 = arith.constant dense<0.000000e+00> : vector<4x8x32xf32>
    %42 = tpu.matmul %39, %41, %cst_24 {dimension_numbers = #tpu.dot_dimension_numbers<[2], [1], [1], [2], [0, 0, 0, 1, 1, 2], [0], [0]>} : vector<4x8x8xf32>, vector<4x8x32xf32>, vector<4x8x32xf32> -> vector<4x8x32xf32>
    "tpu.trace_stop"() : () -> ()
    %cst_25 = arith.constant dense<0.000000e+00> : vector<8x32xf32>
    %43 = vector.multi_reduction <add>, %42, %cst_25 [0] : vector<4x8x32xf32> to vector<8x32xf32>
    %c0_26 = arith.constant 0 : index
    %c0_27 = arith.constant 0 : index
    %c0_28 = arith.constant 0 : index
    %44 = vector.load %arg6[%c0_26, %c0_27, %c0_28] : memref<2x1x32xf32, #tpu.memory_space<vmem>>, vector<1x1x32xf32>
    %45 = vector.shape_cast %44 : vector<1x1x32xf32> to vector<1x32xf32>
    %46 = vector.broadcast %45 : vector<1x32xf32> to vector<8x32xf32>
    %47 = arith.addf %43, %46 : vector<8x32xf32>
    %48 = arith.addf %47, %1 : vector<8x32xf32>
    %c0_29 = arith.constant 0 : index
    %c0_30 = arith.constant 0 : index
    %c0_31 = arith.constant 0 : index
    %49 = vector.load %arg7[%c0_29, %c0_30, %c0_31] : memref<2x1x32xf32, #tpu.memory_space<vmem>>, vector<1x1x32xf32>
    %50 = vector.shape_cast %49 : vector<1x1x32xf32> to vector<1x32xf32>
    %c0_32 = arith.constant 0 : index
    %c0_33 = arith.constant 0 : index
    %c0_34 = arith.constant 0 : index
    %51 = vector.load %arg8[%c0_32, %c0_33, %c0_34] : memref<2x1x32xf32, #tpu.memory_space<vmem>>, vector<1x1x32xf32>
    %52 = vector.shape_cast %51 : vector<1x1x32xf32> to vector<1x32xf32>
    %cst_35 = arith.constant dense<0.000000e+00> : vector<8xf32>
    %53 = vector.multi_reduction <add>, %48, %cst_35 [1] : vector<8x32xf32> to vector<8xf32>
    %54 = vector.shape_cast %53 : vector<8xf32> to vector<8x1xf32>
    %cst_36 = arith.constant 3.200000e+01 : f32
    %55 = vector.broadcast %cst_36 : f32 to vector<8x1xf32>
    %56 = arith.divf %54, %55 : vector<8x1xf32>
    %57 = vector.broadcast %56 : vector<8x1xf32> to vector<8x32xf32>
    %58 = arith.subf %48, %57 : vector<8x32xf32>
    %59 = arith.mulf %58, %58 : vector<8x32xf32>
    %cst_37 = arith.constant dense<0.000000e+00> : vector<8xf32>
    %60 = vector.multi_reduction <add>, %59, %cst_37 [1] : vector<8x32xf32> to vector<8xf32>
    %61 = vector.shape_cast %60 : vector<8xf32> to vector<8x1xf32>
    %cst_38 = arith.constant 3.200000e+01 : f32
    %62 = vector.broadcast %cst_38 : f32 to vector<8x1xf32>
    %63 = arith.divf %61, %62 : vector<8x1xf32>
    %64 = vector.broadcast %56 : vector<8x1xf32> to vector<8x32xf32>
    %65 = arith.subf %48, %64 : vector<8x32xf32>
    %cst_39 = arith.constant 9.99999996E-13 : f32
    %66 = vector.broadcast %cst_39 : f32 to vector<8x1xf32>
    %67 = arith.addf %63, %66 : vector<8x1xf32>
    %68 = math.rsqrt %67 : vector<8x1xf32>
    %69 = vector.broadcast %68 : vector<8x1xf32> to vector<8x32xf32>
    %70 = arith.mulf %65, %69 : vector<8x32xf32>
    %71 = vector.broadcast %50 : vector<1x32xf32> to vector<8x32xf32>
    %72 = arith.mulf %70, %71 : vector<8x32xf32>
    %73 = vector.broadcast %52 : vector<1x32xf32> to vector<8x32xf32>
    %74 = arith.addf %72, %73 : vector<8x32xf32>
    %c0_40 = arith.constant 0 : index
    %c0_41 = arith.constant 0 : index
    %c0_42 = arith.constant 0 : index
    %75 = vector.load %arg9[%c0_40, %c0_41, %c0_42] : memref<2x32x64xf32, #tpu.memory_space<vmem>>, vector<1x32x64xf32>
    %76 = vector.shape_cast %75 : vector<1x32x64xf32> to vector<32x64xf32>
    %cst_43 = arith.constant dense<0.000000e+00> : vector<8x64xf32>
    %77 = tpu.matmul %74, %76, %cst_43 {dimension_numbers = #tpu.dot_dimension_numbers<[1], [0], [0], [1], [0, 0, 1, 1], [], []>} : vector<8x32xf32>, vector<32x64xf32>, vector<8x64xf32> -> vector<8x64xf32>
    %c0_44 = arith.constant 0 : index
    %c0_45 = arith.constant 0 : index
    %c0_46 = arith.constant 0 : index
    %78 = vector.load %arg10[%c0_44, %c0_45, %c0_46] : memref<2x1x64xf32, #tpu.memory_space<vmem>>, vector<1x1x64xf32>
    %79 = vector.shape_cast %78 : vector<1x1x64xf32> to vector<1x64xf32>
    %80 = vector.broadcast %79 : vector<1x64xf32> to vector<8x64xf32>
    %81 = arith.addf %77, %80 : vector<8x64xf32>
    %cst_47 = arith.constant 5.000000e-01 : f32
    %82 = vector.broadcast %cst_47 : f32 to vector<8x64xf32>
    %83 = arith.mulf %82, %81 : vector<8x64xf32>
    %cst_48 = arith.constant 0.707106769 : f32
    %84 = vector.broadcast %cst_48 : f32 to vector<8x64xf32>
    %85 = arith.mulf %81, %84 : vector<8x64xf32>
    %86 = math.erf %85 : vector<8x64xf32>
    %cst_49 = arith.constant 1.000000e+00 : f32
    %87 = vector.broadcast %cst_49 : f32 to vector<8x64xf32>
    %88 = arith.addf %87, %86 : vector<8x64xf32>
    %89 = arith.mulf %83, %88 : vector<8x64xf32>
    %c0_50 = arith.constant 0 : index
    %c0_51 = arith.constant 0 : index
    %c0_52 = arith.constant 0 : index
    %90 = vector.load %arg11[%c0_50, %c0_51, %c0_52] : memref<2x64x32xf32, #tpu.memory_space<vmem>>, vector<1x64x32xf32>
    %91 = vector.shape_cast %90 : vector<1x64x32xf32> to vector<64x32xf32>
    %cst_53 = arith.constant dense<0.000000e+00> : vector<8x32xf32>
    %92 = tpu.matmul %89, %91, %cst_53 {dimension_numbers = #tpu.dot_dimension_numbers<[1], [0], [0], [1], [0, 0, 1, 1], [], []>} : vector<8x64xf32>, vector<64x32xf32>, vector<8x32xf32> -> vector<8x32xf32>
    %c0_54 = arith.constant 0 : index
    %c0_55 = arith.constant 0 : index
    %c0_56 = arith.constant 0 : index
    %93 = vector.load %arg12[%c0_54, %c0_55, %c0_56] : memref<2x1x32xf32, #tpu.memory_space<vmem>>, vector<1x1x32xf32>
    %94 = vector.shape_cast %93 : vector<1x1x32xf32> to vector<1x32xf32>
    %95 = vector.broadcast %94 : vector<1x32xf32> to vector<8x32xf32>
    %96 = arith.addf %92, %95 : vector<8x32xf32>
    %97 = arith.addf %96, %74 : vector<8x32xf32>
    %c0_57 = arith.constant 0 : index
    %c0_58 = arith.constant 0 : index
    %c0_59 = arith.constant 0 : index
    %98 = vector.load %arg13[%c0_57, %c0_58, %c0_59] : memref<2x1x32xf32, #tpu.memory_space<vmem>>, vector<1x1x32xf32>
    %99 = vector.shape_cast %98 : vector<1x1x32xf32> to vector<1x32xf32>
    %c0_60 = arith.constant 0 : index
    %c0_61 = arith.constant 0 : index
    %c0_62 = arith.constant 0 : index
    %100 = vector.load %arg14[%c0_60, %c0_61, %c0_62] : memref<2x1x32xf32, #tpu.memory_space<vmem>>, vector<1x1x32xf32>
    %101 = vector.shape_cast %100 : vector<1x1x32xf32> to vector<1x32xf32>
    %cst_63 = arith.constant dense<0.000000e+00> : vector<8xf32>
    %102 = vector.multi_reduction <add>, %97, %cst_63 [1] : vector<8x32xf32> to vector<8xf32>
    %103 = vector.shape_cast %102 : vector<8xf32> to vector<8x1xf32>
    %cst_64 = arith.constant 3.200000e+01 : f32
    %104 = vector.broadcast %cst_64 : f32 to vector<8x1xf32>
    %105 = arith.divf %103, %104 : vector<8x1xf32>
    %106 = vector.broadcast %105 : vector<8x1xf32> to vector<8x32xf32>
    %107 = arith.subf %97, %106 : vector<8x32xf32>
    %108 = arith.mulf %107, %107 : vector<8x32xf32>
    %cst_65 = arith.constant dense<0.000000e+00> : vector<8xf32>
    %109 = vector.multi_reduction <add>, %108, %cst_65 [1] : vector<8x32xf32> to vector<8xf32>
    %110 = vector.shape_cast %109 : vector<8xf32> to vector<8x1xf32>
    %cst_66 = arith.constant 3.200000e+01 : f32
    %111 = vector.broadcast %cst_66 : f32 to vector<8x1xf32>
    %112 = arith.divf %110, %111 : vector<8x1xf32>
    %113 = vector.broadcast %105 : vector<8x1xf32> to vector<8x32xf32>
    %114 = arith.subf %97, %113 : vector<8x32xf32>
    %cst_67 = arith.constant 9.99999996E-13 : f32
    %115 = vector.broadcast %cst_67 : f32 to vector<8x1xf32>
    %116 = arith.addf %112, %115 : vector<8x1xf32>
    %117 = math.rsqrt %116 : vector<8x1xf32>
    %118 = vector.broadcast %117 : vector<8x1xf32> to vector<8x32xf32>
    %119 = arith.mulf %114, %118 : vector<8x32xf32>
    %120 = vector.broadcast %99 : vector<1x32xf32> to vector<8x32xf32>
    %121 = arith.mulf %119, %120 : vector<8x32xf32>
    %122 = vector.broadcast %101 : vector<1x32xf32> to vector<8x32xf32>
    %123 = arith.addf %121, %122 : vector<8x32xf32>
    %c1 = arith.constant 1 : index
    %c0_68 = arith.constant 0 : index
    %c0_69 = arith.constant 0 : index
    %c0_70 = arith.constant 0 : index
    %124 = vector.load %arg3[%c1, %c0_68, %c0_69, %c0_70] : memref<2x12x32x8xf32, #tpu.memory_space<vmem>>, vector<1x12x32x8xf32>
    %125 = vector.shape_cast %124 : vector<1x12x32x8xf32> to vector<12x32x8xf32>
    %c1_71 = arith.constant 1 : index
    %c0_72 = arith.constant 0 : index
    %c0_73 = arith.constant 0 : index
    %c0_74 = arith.constant 0 : index
    %126 = vector.load %arg4[%c1_71, %c0_72, %c0_73, %c0_74] : memref<2x12x1x8xf32, #tpu.memory_space<vmem>>, vector<1x12x1x8xf32>
    %127 = vector.shape_cast %126 : vector<1x12x1x8xf32> to vector<12x1x8xf32>
    %128 = vector.shape_cast %123 : vector<8x32xf32> to vector<1x8x32xf32>
    %129 = vector.shape_cast %128 : vector<1x8x32xf32> to vector<1x8x32xf32>
    %130 = vector.broadcast %129 : vector<1x8x32xf32> to vector<4x8x32xf32>
    %131 = vector.extract_strided_slice %125 {offsets = [0, 0, 0], sizes = [4, 32, 8], strides = [1, 1, 1]} : vector<12x32x8xf32> to vector<4x32x8xf32>
    "tpu.trace_start"() <{level = 10 : i32, message = "hsk,hkd->hsd"}> : () -> ()
    %cst_75 = arith.constant dense<0.000000e+00> : vector<4x8x8xf32>
    %132 = tpu.matmul %130, %131, %cst_75 {dimension_numbers = #tpu.dot_dimension_numbers<[2], [1], [1], [2], [0, 0, 0, 1, 1, 2], [0], [0]>} : vector<4x8x32xf32>, vector<4x32x8xf32>, vector<4x8x8xf32> -> vector<4x8x8xf32>
    "tpu.trace_stop"() : () -> ()
    %133 = vector.extract_strided_slice %127 {offsets = [0, 0, 0], sizes = [4, 1, 8], strides = [1, 1, 1]} : vector<12x1x8xf32> to vector<4x1x8xf32>
    %134 = vector.broadcast %133 : vector<4x1x8xf32> to vector<4x8x8xf32>
    %135 = arith.addf %132, %134 : vector<4x8x8xf32>
    %136 = vector.extract_strided_slice %125 {offsets = [4, 0, 0], sizes = [4, 32, 8], strides = [1, 1, 1]} : vector<12x32x8xf32> to vector<4x32x8xf32>
    "tpu.trace_start"() <{level = 10 : i32, message = "hsk,hkd->hsd"}> : () -> ()
    %cst_76 = arith.constant dense<0.000000e+00> : vector<4x8x8xf32>
    %137 = tpu.matmul %130, %136, %cst_76 {dimension_numbers = #tpu.dot_dimension_numbers<[2], [1], [1], [2], [0, 0, 0, 1, 1, 2], [0], [0]>} : vector<4x8x32xf32>, vector<4x32x8xf32>, vector<4x8x8xf32> -> vector<4x8x8xf32>
    "tpu.trace_stop"() : () -> ()
    %138 = vector.extract_strided_slice %127 {offsets = [4, 0, 0], sizes = [4, 1, 8], strides = [1, 1, 1]} : vector<12x1x8xf32> to vector<4x1x8xf32>
    %139 = vector.broadcast %138 : vector<4x1x8xf32> to vector<4x8x8xf32>
    %140 = arith.addf %137, %139 : vector<4x8x8xf32>
    %141 = vector.extract_strided_slice %125 {offsets = [8, 0, 0], sizes = [4, 32, 8], strides = [1, 1, 1]} : vector<12x32x8xf32> to vector<4x32x8xf32>
    "tpu.trace_start"() <{level = 10 : i32, message = "hsk,hkd->hsd"}> : () -> ()
    %cst_77 = arith.constant dense<0.000000e+00> : vector<4x8x8xf32>
    %142 = tpu.matmul %130, %141, %cst_77 {dimension_numbers = #tpu.dot_dimension_numbers<[2], [1], [1], [2], [0, 0, 0, 1, 1, 2], [0], [0]>} : vector<4x8x32xf32>, vector<4x32x8xf32>, vector<4x8x8xf32> -> vector<4x8x8xf32>
    "tpu.trace_stop"() : () -> ()
    %143 = vector.extract_strided_slice %127 {offsets = [8, 0, 0], sizes = [4, 1, 8], strides = [1, 1, 1]} : vector<12x1x8xf32> to vector<4x1x8xf32>
    %144 = vector.broadcast %143 : vector<4x1x8xf32> to vector<4x8x8xf32>
    %145 = arith.addf %142, %144 : vector<4x8x8xf32>
    "tpu.trace_start"() <{level = 10 : i32, message = "hqd,hkd->hqk"}> : () -> ()
    %cst_78 = arith.constant dense<0.000000e+00> : vector<4x8x8xf32>
    %146 = tpu.matmul %135, %140, %cst_78 {dimension_numbers = #tpu.dot_dimension_numbers<[2], [2], [1], [1], [0, 0, 0, 1, 1, 1], [0], [0]>} : vector<4x8x8xf32>, vector<4x8x8xf32>, vector<4x8x8xf32> -> vector<4x8x8xf32>
    "tpu.trace_stop"() : () -> ()
    %147 = vector.broadcast %2 : vector<1x1x8xf32> to vector<4x8x8xf32>
    %148 = arith.addf %146, %147 : vector<4x8x8xf32>
    %cst_79 = arith.constant dense<0xFF800000> : vector<4x8xf32>
    %149 = vector.multi_reduction <maximumf>, %148, %cst_79 [2] : vector<4x8x8xf32> to vector<4x8xf32>
    %150 = vector.shape_cast %149 : vector<4x8xf32> to vector<4x8x1xf32>
    %151 = vector.broadcast %150 : vector<4x8x1xf32> to vector<4x8x8xf32>
    %152 = arith.subf %148, %151 : vector<4x8x8xf32>
    %153 = math.exp %152 : vector<4x8x8xf32>
    %cst_80 = arith.constant dense<0.000000e+00> : vector<4x8xf32>
    %154 = vector.multi_reduction <add>, %153, %cst_80 [2] : vector<4x8x8xf32> to vector<4x8xf32>
    %155 = vector.shape_cast %154 : vector<4x8xf32> to vector<4x8x1xf32>
    %cst_81 = arith.constant 1.000000e+00 : f32
    %156 = vector.broadcast %cst_81 : f32 to vector<4x8x1xf32>
    %157 = arith.divf %156, %155 : vector<4x8x1xf32>
    %158 = vector.broadcast %157 : vector<4x8x1xf32> to vector<4x8x8xf32>
    %159 = arith.mulf %153, %158 : vector<4x8x8xf32>
    "tpu.trace_start"() <{level = 10 : i32, message = "hqk,hkd->hqd"}> : () -> ()
    %cst_82 = arith.constant dense<0.000000e+00> : vector<4x8x8xf32>
    %160 = tpu.matmul %159, %145, %cst_82 {dimension_numbers = #tpu.dot_dimension_numbers<[2], [1], [1], [2], [0, 0, 0, 1, 1, 2], [0], [0]>} : vector<4x8x8xf32>, vector<4x8x8xf32>, vector<4x8x8xf32> -> vector<4x8x8xf32>
    "tpu.trace_stop"() : () -> ()
    %c1_83 = arith.constant 1 : index
    %c0_84 = arith.constant 0 : index
    %c0_85 = arith.constant 0 : index
    %c0_86 = arith.constant 0 : index
    %161 = vector.load %arg5[%c1_83, %c0_84, %c0_85, %c0_86] : memref<2x4x8x32xf32, #tpu.memory_space<vmem>>, vector<1x4x8x32xf32>
    %162 = vector.shape_cast %161 : vector<1x4x8x32xf32> to vector<4x8x32xf32>
    "tpu.trace_start"() <{level = 10 : i32, message = "hqd,hdo->hqo"}> : () -> ()
    %cst_87 = arith.constant dense<0.000000e+00> : vector<4x8x32xf32>
    %163 = tpu.matmul %160, %162, %cst_87 {dimension_numbers = #tpu.dot_dimension_numbers<[2], [1], [1], [2], [0, 0, 0, 1, 1, 2], [0], [0]>} : vector<4x8x8xf32>, vector<4x8x32xf32>, vector<4x8x32xf32> -> vector<4x8x32xf32>
    "tpu.trace_stop"() : () -> ()
    %cst_88 = arith.constant dense<0.000000e+00> : vector<8x32xf32>
    %164 = vector.multi_reduction <add>, %163, %cst_88 [0] : vector<4x8x32xf32> to vector<8x32xf32>
    %c1_89 = arith.constant 1 : index
    %c0_90 = arith.constant 0 : index
    %c0_91 = arith.constant 0 : index
    %165 = vector.load %arg6[%c1_89, %c0_90, %c0_91] : memref<2x1x32xf32, #tpu.memory_space<vmem>>, vector<1x1x32xf32>
    %166 = vector.shape_cast %165 : vector<1x1x32xf32> to vector<1x32xf32>
    %167 = vector.broadcast %166 : vector<1x32xf32> to vector<8x32xf32>
    %168 = arith.addf %164, %167 : vector<8x32xf32>
    %169 = arith.addf %168, %123 : vector<8x32xf32>
    %c1_92 = arith.constant 1 : index
    %c0_93 = arith.constant 0 : index
    %c0_94 = arith.constant 0 : index
    %170 = vector.load %arg7[%c1_92, %c0_93, %c0_94] : memref<2x1x32xf32, #tpu.memory_space<vmem>>, vector<1x1x32xf32>
    %171 = vector.shape_cast %170 : vector<1x1x32xf32> to vector<1x32xf32>
    %c1_95 = arith.constant 1 : index
    %c0_96 = arith.constant 0 : index
    %c0_97 = arith.constant 0 : index
    %172 = vector.load %arg8[%c1_95, %c0_96, %c0_97] : memref<2x1x32xf32, #tpu.memory_space<vmem>>, vector<1x1x32xf32>
    %173 = vector.shape_cast %172 : vector<1x1x32xf32> to vector<1x32xf32>
    %cst_98 = arith.constant dense<0.000000e+00> : vector<8xf32>
    %174 = vector.multi_reduction <add>, %169, %cst_98 [1] : vector<8x32xf32> to vector<8xf32>
    %175 = vector.shape_cast %174 : vector<8xf32> to vector<8x1xf32>
    %cst_99 = arith.constant 3.200000e+01 : f32
    %176 = vector.broadcast %cst_99 : f32 to vector<8x1xf32>
    %177 = arith.divf %175, %176 : vector<8x1xf32>
    %178 = vector.broadcast %177 : vector<8x1xf32> to vector<8x32xf32>
    %179 = arith.subf %169, %178 : vector<8x32xf32>
    %180 = arith.mulf %179, %179 : vector<8x32xf32>
    %cst_100 = arith.constant dense<0.000000e+00> : vector<8xf32>
    %181 = vector.multi_reduction <add>, %180, %cst_100 [1] : vector<8x32xf32> to vector<8xf32>
    %182 = vector.shape_cast %181 : vector<8xf32> to vector<8x1xf32>
    %cst_101 = arith.constant 3.200000e+01 : f32
    %183 = vector.broadcast %cst_101 : f32 to vector<8x1xf32>
    %184 = arith.divf %182, %183 : vector<8x1xf32>
    %185 = vector.broadcast %177 : vector<8x1xf32> to vector<8x32xf32>
    %186 = arith.subf %169, %185 : vector<8x32xf32>
    %cst_102 = arith.constant 9.99999996E-13 : f32
    %187 = vector.broadcast %cst_102 : f32 to vector<8x1xf32>
    %188 = arith.addf %184, %187 : vector<8x1xf32>
    %189 = math.rsqrt %188 : vector<8x1xf32>
    %190 = vector.broadcast %189 : vector<8x1xf32> to vector<8x32xf32>
    %191 = arith.mulf %186, %190 : vector<8x32xf32>
    %192 = vector.broadcast %171 : vector<1x32xf32> to vector<8x32xf32>
    %193 = arith.mulf %191, %192 : vector<8x32xf32>
    %194 = vector.broadcast %173 : vector<1x32xf32> to vector<8x32xf32>
    %195 = arith.addf %193, %194 : vector<8x32xf32>
    %c1_103 = arith.constant 1 : index
    %c0_104 = arith.constant 0 : index
    %c0_105 = arith.constant 0 : index
    %196 = vector.load %arg9[%c1_103, %c0_104, %c0_105] : memref<2x32x64xf32, #tpu.memory_space<vmem>>, vector<1x32x64xf32>
    %197 = vector.shape_cast %196 : vector<1x32x64xf32> to vector<32x64xf32>
    %cst_106 = arith.constant dense<0.000000e+00> : vector<8x64xf32>
    %198 = tpu.matmul %195, %197, %cst_106 {dimension_numbers = #tpu.dot_dimension_numbers<[1], [0], [0], [1], [0, 0, 1, 1], [], []>} : vector<8x32xf32>, vector<32x64xf32>, vector<8x64xf32> -> vector<8x64xf32>
    %c1_107 = arith.constant 1 : index
    %c0_108 = arith.constant 0 : index
    %c0_109 = arith.constant 0 : index
    %199 = vector.load %arg10[%c1_107, %c0_108, %c0_109] : memref<2x1x64xf32, #tpu.memory_space<vmem>>, vector<1x1x64xf32>
    %200 = vector.shape_cast %199 : vector<1x1x64xf32> to vector<1x64xf32>
    %201 = vector.broadcast %200 : vector<1x64xf32> to vector<8x64xf32>
    %202 = arith.addf %198, %201 : vector<8x64xf32>
    %cst_110 = arith.constant 5.000000e-01 : f32
    %203 = vector.broadcast %cst_110 : f32 to vector<8x64xf32>
    %204 = arith.mulf %203, %202 : vector<8x64xf32>
    %cst_111 = arith.constant 0.707106769 : f32
    %205 = vector.broadcast %cst_111 : f32 to vector<8x64xf32>
    %206 = arith.mulf %202, %205 : vector<8x64xf32>
    %207 = math.erf %206 : vector<8x64xf32>
    %cst_112 = arith.constant 1.000000e+00 : f32
    %208 = vector.broadcast %cst_112 : f32 to vector<8x64xf32>
    %209 = arith.addf %208, %207 : vector<8x64xf32>
    %210 = arith.mulf %204, %209 : vector<8x64xf32>
    %c1_113 = arith.constant 1 : index
    %c0_114 = arith.constant 0 : index
    %c0_115 = arith.constant 0 : index
    %211 = vector.load %arg11[%c1_113, %c0_114, %c0_115] : memref<2x64x32xf32, #tpu.memory_space<vmem>>, vector<1x64x32xf32>
    %212 = vector.shape_cast %211 : vector<1x64x32xf32> to vector<64x32xf32>
    %cst_116 = arith.constant dense<0.000000e+00> : vector<8x32xf32>
    %213 = tpu.matmul %210, %212, %cst_116 {dimension_numbers = #tpu.dot_dimension_numbers<[1], [0], [0], [1], [0, 0, 1, 1], [], []>} : vector<8x64xf32>, vector<64x32xf32>, vector<8x32xf32> -> vector<8x32xf32>
    %c1_117 = arith.constant 1 : index
    %c0_118 = arith.constant 0 : index
    %c0_119 = arith.constant 0 : index
    %214 = vector.load %arg12[%c1_117, %c0_118, %c0_119] : memref<2x1x32xf32, #tpu.memory_space<vmem>>, vector<1x1x32xf32>
    %215 = vector.shape_cast %214 : vector<1x1x32xf32> to vector<1x32xf32>
    %216 = vector.broadcast %215 : vector<1x32xf32> to vector<8x32xf32>
    %217 = arith.addf %213, %216 : vector<8x32xf32>
    %218 = arith.addf %217, %195 : vector<8x32xf32>
    %c1_120 = arith.constant 1 : index
    %c0_121 = arith.constant 0 : index
    %c0_122 = arith.constant 0 : index
    %219 = vector.load %arg13[%c1_120, %c0_121, %c0_122] : memref<2x1x32xf32, #tpu.memory_space<vmem>>, vector<1x1x32xf32>
    %220 = vector.shape_cast %219 : vector<1x1x32xf32> to vector<1x32xf32>
    %c1_123 = arith.constant 1 : index
    %c0_124 = arith.constant 0 : index
    %c0_125 = arith.constant 0 : index
    %221 = vector.load %arg14[%c1_123, %c0_124, %c0_125] : memref<2x1x32xf32, #tpu.memory_space<vmem>>, vector<1x1x32xf32>
    %222 = vector.shape_cast %221 : vector<1x1x32xf32> to vector<1x32xf32>
    %cst_126 = arith.constant dense<0.000000e+00> : vector<8xf32>
    %223 = vector.multi_reduction <add>, %218, %cst_126 [1] : vector<8x32xf32> to vector<8xf32>
    %224 = vector.shape_cast %223 : vector<8xf32> to vector<8x1xf32>
    %cst_127 = arith.constant 3.200000e+01 : f32
    %225 = vector.broadcast %cst_127 : f32 to vector<8x1xf32>
    %226 = arith.divf %224, %225 : vector<8x1xf32>
    %227 = vector.broadcast %226 : vector<8x1xf32> to vector<8x32xf32>
    %228 = arith.subf %218, %227 : vector<8x32xf32>
    %229 = arith.mulf %228, %228 : vector<8x32xf32>
    %cst_128 = arith.constant dense<0.000000e+00> : vector<8xf32>
    %230 = vector.multi_reduction <add>, %229, %cst_128 [1] : vector<8x32xf32> to vector<8xf32>
    %231 = vector.shape_cast %230 : vector<8xf32> to vector<8x1xf32>
    %cst_129 = arith.constant 3.200000e+01 : f32
    %232 = vector.broadcast %cst_129 : f32 to vector<8x1xf32>
    %233 = arith.divf %231, %232 : vector<8x1xf32>
    %234 = vector.broadcast %226 : vector<8x1xf32> to vector<8x32xf32>
    %235 = arith.subf %218, %234 : vector<8x32xf32>
    %cst_130 = arith.constant 9.99999996E-13 : f32
    %236 = vector.broadcast %cst_130 : f32 to vector<8x1xf32>
    %237 = arith.addf %233, %236 : vector<8x1xf32>
    %238 = math.rsqrt %237 : vector<8x1xf32>
    %239 = vector.broadcast %238 : vector<8x1xf32> to vector<8x32xf32>
    %240 = arith.mulf %235, %239 : vector<8x32xf32>
    %241 = vector.broadcast %220 : vector<1x32xf32> to vector<8x32xf32>
    %242 = arith.mulf %240, %241 : vector<8x32xf32>
    %243 = vector.broadcast %222 : vector<1x32xf32> to vector<8x32xf32>
    %244 = arith.addf %242, %243 : vector<8x32xf32>
    %c0_131 = arith.constant 0 : index
    %c0_132 = arith.constant 0 : index
    %c0_133 = arith.constant 0 : index
    %245 = vector.load %arg15[%c0_131, %c0_132, %c0_133] : memref<1x8x32xf32, #tpu.memory_space<vmem>>, vector<1x8x32xf32>
    %246 = vector.shape_cast %245 : vector<1x8x32xf32> to vector<8x32xf32>
    %247 = vector.shape_cast %244 : vector<8x32xf32> to vector<1x8x32xf32>
    tpu.vector_store %arg15[%c0_131, %c0_132, %c0_133], %247 {strides = array<i32>} : memref<1x8x32xf32, #tpu.memory_space<vmem>>, vector<1x8x32xf32>,
    return
  }
  func.func @transform_0(%arg0: i32) -> (i32, i32, i32) {
    %c0_i32 = arith.constant 0 : i32
    %c0_i32_0 = arith.constant 0 : i32
    %c0_i32_1 = arith.constant 0 : i32
    return %arg0, %c0_i32, %c0_i32_0 : i32, i32, i32
  }
  func.func @transform_1(%arg0: i32) -> (i32, i32, i32) {
    %c0_i32 = arith.constant 0 : i32
    %c0_i32_0 = arith.constant 0 : i32
    %c0_i32_1 = arith.constant 0 : i32
    return %arg0, %c0_i32, %c0_i32_0 : i32, i32, i32
  }
  func.func @transform_2(%arg0: i32) -> (i32, i32, i32, i32) {
    %c0_i32 = arith.constant 0 : i32
    %c0_i32_0 = arith.constant 0 : i32
    %c0_i32_1 = arith.constant 0 : i32
    %c0_i32_2 = arith.constant 0 : i32
    %c0_i32_3 = arith.constant 0 : i32
    return %c0_i32, %c0_i32_0, %c0_i32_1, %c0_i32_2 : i32, i32, i32, i32
  }
  func.func @transform_3(%arg0: i32) -> (i32, i32, i32, i32) {
    %c0_i32 = arith.constant 0 : i32
    %c0_i32_0 = arith.constant 0 : i32
    %c0_i32_1 = arith.constant 0 : i32
    %c0_i32_2 = arith.constant 0 : i32
    %c0_i32_3 = arith.constant 0 : i32
    return %c0_i32, %c0_i32_0, %c0_i32_1, %c0_i32_2 : i32, i32, i32, i32
  }
  func.func @transform_4(%arg0: i32) -> (i32, i32, i32, i32) {
    %c0_i32 = arith.constant 0 : i32
    %c0_i32_0 = arith.constant 0 : i32
    %c0_i32_1 = arith.constant 0 : i32
    %c0_i32_2 = arith.constant 0 : i32
    %c0_i32_3 = arith.constant 0 : i32
    return %c0_i32, %c0_i32_0, %c0_i32_1, %c0_i32_2 : i32, i32, i32, i32
  }
  func.func @transform_5(%arg0: i32) -> (i32, i32, i32) {
    %c0_i32 = arith.constant 0 : i32
    %c0_i32_0 = arith.constant 0 : i32
    %c0_i32_1 = arith.constant 0 : i32
    %c0_i32_2 = arith.constant 0 : i32
    return %c0_i32, %c0_i32_0, %c0_i32_1 : i32, i32, i32
  }
  func.func @transform_6(%arg0: i32) -> (i32, i32, i32) {
    %c0_i32 = arith.constant 0 : i32
    %c0_i32_0 = arith.constant 0 : i32
    %c0_i32_1 = arith.constant 0 : i32
    %c0_i32_2 = arith.constant 0 : i32
    return %c0_i32, %c0_i32_0, %c0_i32_1 : i32, i32, i32
  }
  func.func @transform_7(%arg0: i32) -> (i32, i32, i32) {
    %c0_i32 = arith.constant 0 : i32
    %c0_i32_0 = arith.constant 0 : i32
    %c0_i32_1 = arith.constant 0 : i32
    %c0_i32_2 = arith.constant 0 : i32
    return %c0_i32, %c0_i32_0, %c0_i32_1 : i32, i32, i32
  }
  func.func @transform_8(%arg0: i32) -> (i32, i32, i32) {
    %c0_i32 = arith.constant 0 : i32
    %c0_i32_0 = arith.constant 0 : i32
    %c0_i32_1 = arith.constant 0 : i32
    %c0_i32_2 = arith.constant 0 : i32
    return %c0_i32, %c0_i32_0, %c0_i32_1 : i32, i32, i32
  }
  func.func @transform_9(%arg0: i32) -> (i32, i32, i32) {
    %c0_i32 = arith.constant 0 : i32
    %c0_i32_0 = arith.constant 0 : i32
    %c0_i32_1 = arith.constant 0 : i32
    %c0_i32_2 = arith.constant 0 : i32
    return %c0_i32, %c0_i32_0, %c0_i32_1 : i32, i32, i32
  }
  func.func @transform_10(%arg0: i32) -> (i32, i32, i32) {
    %c0_i32 = arith.constant 0 : i32
    %c0_i32_0 = arith.constant 0 : i32
    %c0_i32_1 = arith.constant 0 : i32
    %c0_i32_2 = arith.constant 0 : i32
    return %c0_i32, %c0_i32_0, %c0_i32_1 : i32, i32, i32
  }
  func.func @transform_11(%arg0: i32) -> (i32, i32, i32) {
    %c0_i32 = arith.constant 0 : i32
    %c0_i32_0 = arith.constant 0 : i32
    %c0_i32_1 = arith.constant 0 : i32
    %c0_i32_2 = arith.constant 0 : i32
    return %c0_i32, %c0_i32_0, %c0_i32_1 : i32, i32, i32
  }
  func.func @transform_12(%arg0: i32) -> (i32, i32, i32) {
    %c0_i32 = arith.constant 0 : i32
    %c0_i32_0 = arith.constant 0 : i32
    %c0_i32_1 = arith.constant 0 : i32
    %c0_i32_2 = arith.constant 0 : i32
    return %c0_i32, %c0_i32_0, %c0_i32_1 : i32, i32, i32
  }
  func.func @transform_13(%arg0: i32) -> (i32, i32, i32) {
    %c0_i32 = arith.constant 0 : i32
    %c0_i32_0 = arith.constant 0 : i32
    %c0_i32_1 = arith.constant 0 : i32
    %c0_i32_2 = arith.constant 0 : i32
    return %c0_i32, %c0_i32_0, %c0_i32_1 : i32, i32, i32
  }
  func.func @transform_14(%arg0: i32) -> (i32, i32, i32) {
    %c0_i32 = arith.constant 0 : i32
    %c0_i32_0 = arith.constant 0 : i32
    %c0_i32_1 = arith.constant 0 : i32
    return %arg0, %c0_i32, %c0_i32_0 : i32, i32, i32
  }
}

</mosaic_0001>

<bundles_post_ra>
// kernel: tpu_custom_call.1
= control target key start
LH: loop header
LB: loop body
LE: loop exit
PB: predicated region body
PF: predicated region fallthrough
CT: control target
= control target key end

     0   :  { %s6960_s0 = inlined_call_operand.vmem [shape: f32[2,8,32], index: 0, kind: input, shape index: {}]   ;;  %s6961_s1 = inlined_call_operand.vmem [shape: f32[2,1,8], index: 1, kind: input, shape index: {}]   ;;  %s6962_s2 = inlined_call_operand.vmem [shape: f32[2,12,32,8], index: 2, kind: input, shape index: {}]   ;;  %s6963_s3 = inlined_call_operand.vmem [shape: f32[2,12,1,8], index: 3, kind: input, shape index: {}]   ;;  %s6964_s4 = inlined_call_operand.vmem [shape: f32[2,4,8,32], index: 4, kind: input, shape index: {}]   ;;  %s6965_s5 = inlined_call_operand.vmem [shape: f32[2,1,32], index: 5, kind: input, shape index: {}]   ;;  %s6966_s6 = inlined_call_operand.vmem [shape: f32[2,1,32], index: 6, kind: input, shape index: {}]   ;;  %s6967_s7 = inlined_call_operand.vmem [shape: f32[2,1,32], index: 7, kind: input, shape index: {}]   ;;  %s6968_s8 = inlined_call_operand.vmem [shape: f32[2,32,64], index: 8, kind: input, shape index: {}]   ;;  %s6969_s9 = inlined_call_operand.vmem [shape: f32[2,1,64], index: 9, kind: input, shape index: {}]   ;;  %s6970_s10 = inlined_call_operand.vmem [shape: f32[2,64,32], index: 10, kind: input, shape index: {}]   ;;  %s6971_s11 = inlined_call_operand.vmem [shape: f32[2,1,32], index: 11, kind: input, shape index: {}]   ;;  %s6972_s12 = inlined_call_operand.vmem [shape: f32[2,1,32], index: 12, kind: input, shape index: {}]   ;;  %s6973_s13 = inlined_call_operand.vmem [shape: f32[2,1,32], index: 13, kind: input, shape index: {}]   ;;  %s6974_s14 = inlined_call_operand.hbm [shape: f32[2,8,32], index: 14, kind: output, shape index: {}]  }
   0x1   :  { %6978 = sst [smem:[#allocation8_spill]] %s6960_s0 }
   0x2   :  { %6979 = sst [smem:[#allocation9_spill]] %s6961_s1 }
   0x3   :  { %6980 = sst [smem:[#allocation10_spill]] %s6962_s2 }
   0x4   :  { %19 = vsyncpa [#allocation3], 0 }
   0x5   :  { %21 = vsyncpa [#allocation3 + $0x1], 0  ;;  %s5975_s29 = smov 0   ;;  %s5977_s30 = smov 0  }
   0x6   :  { %s5979_s15 = smov 0   ;;  %s5981_s16 = smov 0  }
   0x7 LB: > { %6981 = sst [smem:[#allocation5_spill]] %s5891_s15  ;;  %s5996_s17 = sadd.s32 4294967295, %s5895_s16   ;;  %s5895_s16 = sphi %s5981_s16, %s6989_s16   ;;  %s5891_s15 = sphi %s5979_s15, %s6991_s15   ;;  %s5887_s30 = sphi %s5977_s30, %s6993_s30   ;;  %s5883_s29 = sphi %s5975_s29, %s6992_s29  }
   0x8   : > { %s4918_s18 = sadd.s32 4294967294, %s5895_s16   ;;  %s6000_s19 = sadd.s32 1, %s5895_s16  }
   0x9   : > { %6982 = sst [smem:[#allocation6_spill]] %s6000_s19  ;;  %s338_s20 = sadd.s32 1, %s5891_s15 }
   0xa   : > { %s335_s21 = ssub.s32 %s5895_s16, %s6000_s19  ;;  %p348_p0 = scmp.ne.s32.totalorder %s5891_s15, %s5887_s30 }
   0xb   : > { %p336_p1 = scmp.eq.s32.totalorder %s335_s21, 0  ;;  %p349_p2 = scmp.eq.s32.totalorder %s5996_s17, 1 }
   0xc   : > { %p354_p3 = scmp.ne.s32.totalorder %s5887_s30, %s5883_s29  ;;  %p355_p4 = scmp.eq.s32.totalorder %s4918_s18, 1 }
   0xd   : > { %s6011_s22 = scalar_select %p336_p1, %s5891_s15, %s338_s20  }
   0xe   : > { %p6013_p5 = por %p349_p2, %p348_p0  ;;  %p6017_p6 = por %p355_p4, %p354_p3 }
   0xf   : > { %6983 = sst [smem:[#allocation7_spill]] %s6011_s22  ;;  %p4921_p7 = scmp.ge.s32.totalorder %s5895_s16, 1 }
  0x10   : > { %p422_p8 = scmp.lt.s32.totalorder %s5895_s16, 3 }
  0x12   : > { %p423_p9 = pnand %p4921_p7, %p422_p8 }
  0x13   : > { %s6986_s2 = sld [smem:[#allocation10_spill]] (!%p423_p9)  ;;  %p470_p10 = scmp.lt.s32.totalorder (!%p423_p9), %s5996_s17, 1 }
  0x14   : > { %426 = sbr.rel (%p423_p9) target bundleno = 4373 (0x1115), region = 76  ;;  %s6987_s0 = sld [smem:[#allocation8_spill]] (!%p423_p9) }
  0x15   : > { %s6988_s1 = sld [smem:[#allocation9_spill]] (!%p423_p9)  ;;  %s467_s21 = sand.u32 (!%p423_p9), 1, %s5887_s30  }
  0x16   : > { %s5107_s18 = sshll.u32 (!%p423_p9), %s5996_s17, 7  ;;  %s5899_s28 = smov (!%p423_p9), [#allocation2]  }
  0x17   : > { %s5839_s15 = sshll.u32 (!%p423_p9), %s5899_s28, 4  ;;  %s5840_s15 = int_to_ptr.vmem [resolvable:$false] %s5839_s15 }
  0x19   : > { %v482_v0 = vld [vmem:[%s6986_s2 + $0x18] sm:$0xff]  ;;  %v5897_v2 = vmov 0.0   ;;  %v481_v3 = vld [vmem:[%s6986_s2 + $0x10] sm:$0xff]  ;;  %s6039_s25 = scalar_select %p470_p10, %s5996_s17, 1  ;;  %v480_v5 = vld [vmem:[%s6986_s2 + $0x8] sm:$0xff]  ;;  %vm563_vm0 = vcmask 261120  }
  0x1a   : > { %v486_v1 = vld [vmem:[%s6986_s2 + $0x38] sm:$0xff]  ;;  %5306 = vmatprep.subr.mxu0 %v5897_v2  ;;  %5317 = vmatprep.subr.mxu1 %v5897_v2  ;;  %v485_v4 = vld [vmem:[%s6986_s2 + $0x30] sm:$0xff]  ;;  %v484_v6 = vld [vmem:[%s6986_s2 + $0x28] sm:$0xff]  ;;  %vm5898_vm1 = vmmov 0   ;;  %vm1461_vm2 = vcmask 64512   ;;  %vm2552_vm3 = vcmask 523264  }
  0x1b   : > { %5307 = vmatpush3.msra.mxu0 %v482_v0  ;;  %5318 = vmatpush3.msra.mxu1 %v486_v1  ;;  %s4923_s22 = sshll.u32 %s6039_s25, 3  ;;  %v479_v7 = vld [vmem:[%s6986_s2] sm:$0xff]  ;;  %v490_v10 = vld [vmem:[%s6986_s2 + $0x58] sm:$0xff]  ;;  %v489_v12 = vld [vmem:[%s6986_s2 + $0x50] sm:$0xff]  ;;  %s5841_s17 = scalar_lea.vmem %s5840_s15, 256 }
  0x1c   : > { %5308 = vmatprep.subr.mxu0 %v5897_v2  ;;  %5319 = vmatprep.subr.mxu1 %v5897_v2  ;;  %s473_s26 = scalar_lea.vmem %s6987_s0, %s4923_s22  ;;  %v483_v8 = vld [vmem:[%s6986_s2 + $0x20] sm:$0xff]  ;;  %v494_v11 = vld [vmem:[%s6986_s2 + $0x78] sm:$0xff]  ;;  %v493_v13 = vld [vmem:[%s6986_s2 + $0x70] sm:$0xff]  ;;  %s476_s22 = scalar_lea.vmem %s6988_s1, %s6039_s25 }
  0x1d   : > { %5309 = vmatpush3.msra.mxu0 %v481_v3  ;;  %5320 = vmatpush3.msra.mxu1 %v485_v4  ;;  %v6061_v9 = vld [vmem:[%s473_s26] sm:$0xff]  ;;  %v488_v14 = vld [vmem:[%s6986_s2 + $0x48] sm:$0xff]  ;;  %v498_v18 = vld [vmem:[%s6986_s2 + $0x98] sm:$0xff]  ;;  %s4922_s26 = sshll.u32 %s467_s21, 3  ;;  %s4848_s1 = scalar_lea.hbm %s6974_s14, %s5107_s18 }
  0x1e   : > { %5310 = vmatprep.subr.mxu0 %v5897_v2  ;;  %5321 = vmatprep.subr.mxu1 %v5897_v2  ;;  %v492_v15 = vld [vmem:[%s6986_s2 + $0x68] sm:$0xff]  ;;  %v487_v16 = vld [vmem:[%s6986_s2 + $0x40] sm:$0xff]  ;;  %v502_v19 = vld [vmem:[%s6986_s2 + $0xb8] sm:$0xff] }
  0x1f   : > { %5311 = vmatpush3.msra.mxu0 %v480_v5  ;;  %5322 = vmatpush3.msra.mxu1 %v484_v6  ;;  %v491_v17 = vld [vmem:[%s6986_s2 + $0x60] sm:$0xff]  ;;  %v497_v20 = vld [vmem:[%s6986_s2 + $0x90] sm:$0xff]  ;;  %v496_v22 = vld [vmem:[%s6986_s2 + $0x88] sm:$0xff] }
  0x20   : > { %5312 = vmatprep.subr.mxu0 %v5897_v2  ;;  %5323 = vmatprep.subr.mxu1 %v5897_v2  ;;  %v501_v21 = vld [vmem:[%s6986_s2 + $0xb0] sm:$0xff]  ;;  %v500_v23 = vld [vmem:[%s6986_s2 + $0xa8] sm:$0xff]  ;;  %v495_v24 = vld [vmem:[%s6986_s2 + $0x80] sm:$0xff] }
  0x21   : > { %5313 = vmatpush3.msra.mxu0 %v479_v7  ;;  %5314 = vmatprep.mubr.msk.f32.mxu0 %vm5898_vm1, %v5897_v2  ;;  %v499_v25 = vld [vmem:[%s6986_s2 + $0xa0] sm:$0xff]  ;;  %v506_v26 = vld [vmem:[%s6986_s2 + $0xd8] sm:$0xff]  ;;  %v505_v28 = vld [vmem:[%s6986_s2 + $0xd0] sm:$0xff] }
  0x22   : > { %5324 = vmatpush3.msra.mxu1 %v483_v8  ;;  %5315 = vmatmul.mubr.msk.f32.vlgmr.msra.gmra.mxu0 %vm563_vm0, %v6061_v9  ;;  %v510_v27 = vld [vmem:[%s6986_s2 + $0xf8] sm:$0xff]  ;;  %v509_v29 = vld [vmem:[%s6986_s2 + $0xf0] sm:$0xff]  ;;  %v504_v30 = vld [vmem:[%s6986_s2 + $0xc8] sm:$0xff] }
  0x23   : > { %5325 = vmatprep.mubr.msk.f32.mxu1 %vm5898_vm1, %v5897_v2  ;;  %5328 = vmatprep.subr.mxu0 %v5897_v2  ;;  %v508_v31 = vld [vmem:[%s6986_s2 + $0xe8] sm:$0xff]  ;;  %v503_v32 = vld [vmem:[%s6986_s2 + $0xc0] sm:$0xff]  ;;  %v514_v34 = vld [vmem:[%s6986_s2 + $0x118] sm:$0xff] }
  0x24   : > { %5339 = vmatprep.subr.mxu1 %v5897_v2  ;;  %5326 = vmatmul.mubr.msk.f32.vlgmr.msra.gmra.mxu1 %vm563_vm0, %v6061_v9  ;;  %v507_v33 = vld [vmem:[%s6986_s2 + $0xe0] sm:$0xff]  ;;  %v513_v35 = vld [vmem:[%s6986_s2 + $0x110] sm:$0xff]  ;;  %v512_v36 = vld [vmem:[%s6986_s2 + $0x108] sm:$0xff] }
  0x25   : > { %5329 = vmatpush3.msra.mxu0 %v490_v10  ;;  %5340 = vmatpush3.msra.mxu1 %v494_v11  ;;  %v511_v37 = vld [vmem:[%s6986_s2 + $0x100] sm:$0xff]  ;;  %v522_v38 = vld [vmem:[%s6986_s2 + $0x158] sm:$0xff]  ;;  %v521_v40 = vld [vmem:[%s6986_s2 + $0x150] sm:$0xff] }
  0x26   : > { %5330 = vmatprep.subr.mxu0 %v5897_v2  ;;  %5341 = vmatprep.subr.mxu1 %v5897_v2  ;;  %v518_v39 = vld [vmem:[%s6986_s2 + $0x138] sm:$0xff]  ;;  %v517_v41 = vld [vmem:[%s6986_s2 + $0x130] sm:$0xff]  ;;  %v520_v42 = vld [vmem:[%s6986_s2 + $0x148] sm:$0xff] }
  0x27   : > { %5331 = vmatpush3.msra.mxu0 %v489_v12  ;;  %5342 = vmatpush3.msra.mxu1 %v493_v13  ;;  %v516_v43 = vld [vmem:[%s6986_s2 + $0x128] sm:$0xff]  ;;  %v519_v44 = vld [vmem:[%s6986_s2 + $0x140] sm:$0xff]  ;;  %v526_v46 = vld [vmem:[%s6986_s2 + $0x178] sm:$0xff] }
  0x28   : > { %5332 = vmatprep.subr.mxu0 %v5897_v2  ;;  %5343 = vmatprep.subr.mxu1 %v5897_v2  ;;  %v515_v45 = vld [vmem:[%s6986_s2 + $0x120] sm:$0xff]  ;;  %v525_v47 = vld [vmem:[%s6986_s2 + $0x170] sm:$0xff]  ;;  %v524_v48 = vld [vmem:[%s6986_s2 + $0x168] sm:$0xff] }
  0x29   : > { %5333 = vmatpush3.msra.mxu0 %v488_v14  ;;  %5344 = vmatpush3.msra.mxu1 %v492_v15  ;;  %v523_v49 = vld [vmem:[%s6986_s2 + $0x160] sm:$0xff] }
  0x2a   : > { %5334 = vmatprep.subr.mxu0 %v5897_v2  ;;  %5345 = vmatprep.subr.mxu1 %v5897_v2  ;;  %v4932_v58 = vld [vmem:[%s6963_s3 + $0x4] ss:$0 sm:$0xff]  ;;  %v4933_v60 = vld [vmem:[%s6963_s3 + $0x5] ss:$0 sm:$0xff]  ;;  %v4924_v61 = vld [vmem:[%s6963_s3] ss:$0 sm:$0xff] }
  0x2b   : > { %5335 = vmatpush3.msra.mxu0 %v487_v16  ;;  %5336 = vmatprep.mubr.msk.f32.mxu0 %vm5898_vm1, %v5897_v2  ;;  %v4925_v5 = vld [vmem:[%s6963_s3 + $0x1] ss:$0 sm:$0xff]  ;;  %v4934_v7 = vld [vmem:[%s6963_s3 + $0x6] ss:$0 sm:$0xff]  ;;  %v4935_v8 = vld [vmem:[%s6963_s3 + $0x7] ss:$0 sm:$0xff] }
  0x2c   : > { %5346 = vmatpush3.msra.mxu1 %v491_v17  ;;  %5337 = vmatmul.mubr.msk.f32.vlgmr.msra.gmra.mxu0 %vm563_vm0, %v6061_v9  ;;  %v4926_v12 = vld [vmem:[%s6963_s3 + $0x2] ss:$0 sm:$0xff]  ;;  %v4927_v13 = vld [vmem:[%s6963_s3 + $0x3] ss:$0 sm:$0xff] }
  0x2d   : > { %5347 = vmatprep.mubr.msk.f32.mxu1 %vm5898_vm1, %v5897_v2  ;;  %5350 = vmatprep.subr.mxu0 %v5897_v2 }
  0x2e   : > { %5361 = vmatprep.subr.mxu1 %v5897_v2  ;;  %5348 = vmatmul.mubr.msk.f32.vlgmr.msra.gmra.mxu1 %vm563_vm0, %v6061_v9 }
  0x2f   : > { %5351 = vmatpush3.msra.mxu0 %v498_v18  ;;  %5362 = vmatpush3.msra.mxu1 %v502_v19 }
  0x30   : > { %5352 = vmatprep.subr.mxu0 %v5897_v2  ;;  %5363 = vmatprep.subr.mxu1 %v5897_v2 }
  0x31   : > { %5353 = vmatpush3.msra.mxu0 %v497_v20  ;;  %5364 = vmatpush3.msra.mxu1 %v501_v21  ;;  %v4940_v20 = vld [vmem:[%s6963_s3 + $0x8] ss:$0 sm:$0xff] }
  0x32   : > { %5354 = vmatprep.subr.mxu0 %v5897_v2  ;;  %5365 = vmatprep.subr.mxu1 %v5897_v2 }
  0x33   : > { %5355 = vmatpush3.msra.mxu0 %v496_v22  ;;  %5366 = vmatpush3.msra.mxu1 %v500_v23 }
  0x34   : > { %5356 = vmatprep.subr.mxu0 %v5897_v2  ;;  %5367 = vmatprep.subr.mxu1 %v5897_v2 }
  0x35   : > { %5357 = vmatpush3.msra.mxu0 %v495_v24  ;;  %5358 = vmatprep.mubr.msk.f32.mxu0 %vm5898_vm1, %v5897_v2 }
  0x36   : > { %5368 = vmatpush3.msra.mxu1 %v499_v25  ;;  %5359 = vmatmul.mubr.msk.f32.vlgmr.msra.gmra.mxu0 %vm563_vm0, %v6061_v9 }
  0x37   : > { %5369 = vmatprep.mubr.msk.f32.mxu1 %vm5898_vm1, %v5897_v2  ;;  %5372 = vmatprep.subr.mxu0 %v5897_v2 }
  0x38   : > { %5383 = vmatprep.subr.mxu1 %v5897_v2  ;;  %5370 = vmatmul.mubr.msk.f32.vlgmr.msra.gmra.mxu1 %vm563_vm0, %v6061_v9 }
  0x39   : > { %5373 = vmatpush3.msra.mxu0 %v506_v26  ;;  %5384 = vmatpush3.msra.mxu1 %v510_v27  ;;  %v4941_v26 = vld [vmem:[%s6963_s3 + $0x9] ss:$0 sm:$0xff] }
  0x3a   : > { %5374 = vmatprep.subr.mxu0 %v5897_v2  ;;  %5385 = vmatprep.subr.mxu1 %v5897_v2 }
  0x3b   : > { %5375 = vmatpush3.msra.mxu0 %v505_v28  ;;  %5386 = vmatpush3.msra.mxu1 %v509_v29 }
  0x3c   : > { %5376 = vmatprep.subr.mxu0 %v5897_v2  ;;  %5387 = vmatprep.subr.mxu1 %v5897_v2 }
  0x3d   : > { %5377 = vmatpush3.msra.mxu0 %v504_v30  ;;  %5388 = vmatpush3.msra.mxu1 %v508_v31 }
  0x3e   : > { %5378 = vmatprep.subr.mxu0 %v5897_v2  ;;  %5389 = vmatprep.subr.mxu1 %v5897_v2 }
  0x3f   : > { %5379 = vmatpush3.msra.mxu0 %v503_v32  ;;  %5380 = vmatprep.mubr.msk.f32.mxu0 %vm5898_vm1, %v5897_v2  ;;  %v6339_v32 = vld [vmem:[%s476_s22] ss:$0 sm:$0xff]  ;;  %s469_s22 = scalar_lea.vmem [#allocation2], %s4922_s26 }
  0x40   : > { %5390 = vmatpush3.msra.mxu1 %v507_v33  ;;  %5391 = vmatprep.mubr.msk.f32.mxu1 %vm5898_vm1, %v5897_v2  ;;  %s4850_s25 = sshll.u32 %s469_s22, 4  ;;  %s4851_s25 = int_to_ptr.vmem [resolvable:$true] %s4850_s25 }
  0x41   : > { %5381 = vmatmul.mubr.msk.f32.vlgmr.msra.gmra.mxu0 %vm563_vm0, %v6061_v9  ;;  %5392 = vmatmul.mubr.msk.f32.vlgmr.msra.gmra.mxu1 %vm563_vm0, %v6061_v9  ;;  %s5835_s27 = scalar_lea.vmem %s4851_s25, 128  ;;  %p5842_p0 = scmp.lt.s32.totalorder %s4851_s25, %s5840_s15 }
  0x42   : > { %5394 = vmatprep.subr.mxu0 %v5897_v2  ;;  %5402 = vmatprep.mubr.msk.f32.mxu0 %vm5898_vm1, %v5897_v2  ;;  %p5836_p11 = scmp.ne.s32.totalorder %s4851_s25, %s5835_s27  ;;  %p5843_p1 = scmp.lt.s32.totalorder %s5841_s17, %s5835_s27 }
  0x43   : > { %5405 = vmatprep.subr.mxu1 %v5897_v2  ;;  %5413 = vmatprep.mubr.msk.f32.mxu1 %vm5898_vm1, %v5897_v2 }
  0x44   : > { %5395 = vmatpush3.msra.mxu0 %v514_v34  ;;  %5406 = vmatpush3.msra.mxu1 %v518_v39  ;;  %p5837_p12 = pnand %p5836_p11, %p6013_p5  ;;  %p5844_p2 = por %p5843_p1, %p5842_p0 }
  0x45   : > { %5396 = vmatprep.subr.mxu0 %v5897_v2  ;;  %5407 = vmatprep.subr.mxu1 %v5897_v2 }
  0x46   : > { %5397 = vmatpush3.msra.mxu0 %v513_v35  ;;  %5408 = vmatpush3.msra.mxu1 %v517_v41  ;;  %p5838_p13 = pneg %p5837_p12 }
  0x47   : > { %5398 = vmatprep.subr.mxu0 %v5897_v2  ;;  %5409 = vmatprep.subr.mxu1 %v5897_v2 }
  0x48   : > { %5399 = vmatpush3.msra.mxu0 %v512_v36  ;;  %5410 = vmatpush3.msra.mxu1 %v516_v43  ;;  %p5845_p3 = pnand %p5844_p2, %p5838_p13 }
  0x49   : > { %5400 = vmatprep.subr.mxu0 %v5897_v2  ;;  %5411 = vmatprep.subr.mxu1 %v5897_v2 }
  0x4a   : > { %5401 = vmatpush3.msra.mxu0 %v511_v37  ;;  %5412 = vmatpush3.msra.mxu1 %v515_v45 }
  0x4b   : > { %5416 = vmatprep.subr.mxu0 %v5897_v2  ;;  %5403 = vmatmul.mubr.msk.f32.vlgmr.msra.gmra.mxu0 %vm563_vm0, %v6061_v9 }
  0x4c   : > { %5424 = vmatprep.mubr.msk.f32.mxu0 %vm5898_vm1, %v5897_v2  ;;  %5417 = vmatpush3.msra.mxu0 %v522_v38 }
  0x4d   : > { %5418 = vmatprep.subr.mxu0 %v5897_v2  ;;  %5427 = vmatprep.subr.mxu1 %v5897_v2 }
  0x4e   : > { %5419 = vmatpush3.msra.mxu0 %v521_v40  ;;  %5414 = vmatmul.mubr.msk.f32.vlgmr.msra.gmra.mxu1 %vm563_vm0, %v6061_v9 }
  0x4f   : > { %5420 = vmatprep.subr.mxu0 %v5897_v2  ;;  %5428 = vmatpush3.msra.mxu1 %v526_v46 }
  0x50   : > { %5421 = vmatpush3.msra.mxu0 %v520_v42  ;;  %5435 = vmatprep.mubr.msk.f32.mxu1 %vm5898_vm1, %v5897_v2 }
  0x51   : > { %5422 = vmatprep.subr.mxu0 %v5897_v2  ;;  %5429 = vmatprep.subr.mxu1 %v5897_v2 }
  0x52   : > { %5423 = vmatpush3.msra.mxu0 %v519_v44  ;;  %5430 = vmatpush3.msra.mxu1 %v525_v47 }
  0x53   : > { %5425 = vmatmul.mubr.msk.f32.vlgmr.msra.gmra.mxu0 %vm563_vm0, %v6061_v9  ;;  %5438 = vmatprep.subr.mxu0 %v5897_v2 }
  0x54   : > { %5440 = vmatprep.mubr.msk.f32.mxu0 %vm5898_vm1, %v5897_v2  ;;  %5431 = vmatprep.subr.mxu1 %v5897_v2 }
  0x55   : > { %5432 = vmatpush3.msra.mxu1 %v524_v48 }
  0x56   : > { %5433 = vmatprep.subr.mxu1 %v5897_v2 }
  0x57   : > { %5434 = vmatpush3.msra.mxu1 %v523_v49 }
  0x58   : > { %5436 = vmatmul.mubr.msk.f32.vlgmr.msra.gmra.mxu1 %vm563_vm0, %v6061_v9  ;;  %5453 = vmatprep.subr.mxu1 %v5897_v2 }
  0x59   : > { %5455 = vmatprep.mubr.msk.f32.mxu1 %vm5898_vm1, %v5897_v2 }
  0xe2   : > { %v633_v50 = vpop.f32.mrf.mxu0 }
  0xe3   : > { %v634_v3 = vadd.f32 %v4924_v61, %v633_v50 }
  0xe4   : > { %v5316_v51 = vpop.f32.mrf.mxu0  ;;  %v703_v52 = vpop.f32.mrf.mxu1 }
  0xe5   : > { %v704_v6 = vadd.f32 %v4925_v5, %v703_v52 }
  0xe6   : > { %v5327_v53 = vpop.f32.mrf.mxu1 }
  0xec   : > { %v773_v54 = vpop.f32.mrf.mxu0 }
  0xed   : > { %v774_v18 = vadd.f32 %v4926_v12, %v773_v54 }
  0xee   : > { %v5338_v55 = vpop.f32.mrf.mxu0  ;;  %v843_v56 = vpop.f32.mrf.mxu1 }
  0xef   : > { %v844_v19 = vadd.f32 %v4927_v13, %v843_v56 }
  0xf0   : > { %v5349_v57 = vpop.f32.mrf.mxu1 }
  0xf6   : > { %v937_v59 = vpop.f32.mrf.mxu0 }
  0xf7   : > { %v938_v62 = vadd.f32 %v4932_v58, %v937_v59 }
  0xf8   : > { %v5360_v63 = vpop.f32.mrf.mxu0  ;;  %v1007_v0 = vpop.f32.mrf.mxu1 }
  0xf9   : > { %v1008_v1 = vadd.f32 %v4933_v60, %v1007_v0  ;;  %5439 = vmatpush3.xpose.msk.msra.mxu0 %vm1461_vm2, %v938_v62 }
  0xfa   : > { %v5371_v4 = vpop.f32.mrf.mxu1  ;;  %5443 = vmatprep.subr.mxu0 %v5897_v2 }
  0xfc   : > { %5441 = vmatmul.mubr.msk.f32.vlgmr.msra.gmra.mxu0 %vm1461_vm2, %v634_v3 }
  0xfd   : > { %5444 = vmatpush3.xpose.msk.msra.mxu0 %vm1461_vm2, %v1008_v1  ;;  %5445 = vmatprep.mubr.msk.f32.mxu0 %vm5898_vm1, %v5897_v2 }
  0xfe   : > { %5448 = vmatprep.subr.mxu0 %v5897_v2 }
 0x100   : > { %5446 = vmatmul.mubr.msk.f32.vlgmr.msra.gmra.mxu0 %vm1461_vm2, %v704_v6 }
 0x101   : > { %v1077_v10 = vpop.f32.mrf.mxu0  ;;  %v1147_v11 = vpop.f32.mrf.mxu1  ;;  %5450 = vmatprep.mubr.msk.f32.mxu0 %vm5898_vm1, %v5897_v2 }
 0x102   : > { %v1078_v14 = vadd.f32 %v4934_v7, %v1077_v10  ;;  %v1148_v15 = vadd.f32 %v4935_v8, %v1147_v11  ;;  %v4942_v10 = vld [vmem:[%s6963_s3 + $0xa] ss:$0 sm:$0xff] }
 0x103   : > { %v5382_v16 = vpop.f32.mrf.mxu0  ;;  %v5393_v17 = vpop.f32.mrf.mxu1 }
 0x104   : > { %5449 = vmatpush3.xpose.msk.msra.mxu0 %vm1461_vm2, %v1078_v14  ;;  %5454 = vmatpush3.xpose.msk.msra.mxu1 %vm1461_vm2, %v1148_v15  ;;  %v4943_v15 = vld [vmem:[%s6963_s3 + $0xb] ss:$0 sm:$0xff] }
 0x105   : > { %5458 = vmatprep.subr.mxu0 %v5897_v2  ;;  %5463 = vmatprep.subr.mxu1 %v5897_v2 }
 0x107   : > { %5451 = vmatmul.mubr.msk.f32.vlgmr.msra.gmra.mxu0 %vm1461_vm2, %v774_v18  ;;  %5456 = vmatmul.mubr.msk.f32.vlgmr.msra.gmra.mxu1 %vm1461_vm2, %v844_v19 }
 0x108   : > { %5460 = vmatprep.mubr.msk.f32.mxu0 %vm5898_vm1, %v5897_v2  ;;  %5465 = vmatprep.mubr.msk.f32.mxu1 %vm5898_vm1, %v5897_v2 }
 0x10b   : > { %v1241_v21 = vpop.f32.mrf.mxu0 }
 0x10c   : > { %v1242_v22 = vadd.f32 %v4940_v20, %v1241_v21 }
 0x10d   : > { %v5404_v23 = vpop.f32.mrf.mxu0 }
 0x10e   : > { %5459 = vmatpush3.msra.mxu0 %v1242_v22  ;;  %v1311_v27 = vpop.f32.mrf.mxu1  ;;  %v2106_v23 = vld [vmem:[%s6964_s4] sm:$0xff] }
 0x10f   : > { %5468 = vmatprep.subr.mxu0 %v5897_v2  ;;  %v1312_v28 = vadd.f32 %v4941_v26, %v1311_v27 }
 0x110   : > { %v5415_v29 = vpop.f32.mrf.mxu1 }
 0x111   : > { %5464 = vmatpush3.msra.mxu1 %v1312_v28  ;;  %v2109_v28 = vld [vmem:[%s6964_s4 + $0x18] sm:$0xff] }
 0x112   : > { %5473 = vmatprep.subr.mxu1 %v5897_v2 }
 0x113   : > { %v6327_v24 = vpop.f32.mrf.mxu0 }
 0x114   : > { %v1382_v14 = vadd.f32 %v4942_v10, %v6327_v24  ;;  %v2107_v24 = vld [vmem:[%s6964_s4 + $0x8] sm:$0xff]  ;;  %v2544_v10 = vld [vmem:[%s6970_s10 + $0x38] sm:$0xff] }
 0x115   : > { %v5426_v25 = vpop.f32.mrf.mxu0 }
 0x116   : > { %v2108_v25 = vld [vmem:[%s6964_s4 + $0x10] sm:$0xff] }
 0x118   : > { %v6333_v30 = vpop.f32.mrf.mxu1 }
 0x119   : > { %v1452_v18 = vadd.f32 %v4943_v15, %v6333_v30  ;;  %v2539_v15 = vld [vmem:[%s6970_s10 + $0x10] sm:$0xff] }
 0x11a   : > { %v5437_v31 = vpop.f32.mrf.mxu1 }
 0x1bc   : > { %v1534_v33 = vpop.f32.mrf.mxu0 }
 0x1bd   : > { %v1535_v34 = vadd.f32 %v6339_v32, %v1534_v33 }
 0x1be   : > { %v5442_v35 = vpop.f32.mrf.mxu0 }
 0x1bf   : > { %v1766_v36 = vsel %vm1461_vm2, %v1535_v34, -inf }
 0x1c0   : > { %1767 = vmax.xlane.f32.xlu0 %v1766_v36  ;;  %v1610_v37 = vpop.f32.mrf.mxu0 }
 0x1c1   : > { %v1611_v38 = vadd.f32 %v6339_v32, %v1610_v37 }
 0x1c2   : > { %v5447_v39 = vpop.f32.mrf.mxu0 }
 0x1c3   : > { %v1769_v40 = vsel %vm1461_vm2, %v1611_v38, -inf }
 0x1c4   : > { %1770 = vmax.xlane.f32.xlu0 %v1769_v40 }
 0x1c7   : > { %v1762_v41 = vpop.f32.mrf.mxu1  ;;  %v1686_v42 = vpop.f32.mrf.mxu0 }
 0x1c8   : > { %v1687_v43 = vadd.f32 %v6339_v32, %v1686_v42  ;;  %v1763_v46 = vadd.f32 %v6339_v32, %v1762_v41 }
 0x1c9   : > { %v5452_v44 = vpop.f32.mrf.mxu0  ;;  %v5457_v45 = vpop.f32.mrf.mxu1 }
 0x1ca   : > { %v1772_v47 = vsel %vm1461_vm2, %v1687_v43, -inf  ;;  %v1775_v48 = vsel %vm1461_vm2, %v1763_v46, -inf }
 0x1cb   : > { %1773 = vmax.xlane.f32.xlu1 %v1772_v47 }
 0x1cf   : > { %1776 = vmax.xlane.f32.xlu1 %v1775_v48 }
 0x249   : > { %v1768_v49 = vpop.xlane.xlu0 %1767 }
 0x24a   : > { %v1778_v50 = vsub.f32 %v1535_v34, %v1768_v49  ;;  %v4965_v49 = vld [vmem:[%s6965_s5] ss:$0 sm:$0xff] }
 0x24c   : > { %v1782_v51 = vmul.f32 1.442695, %v1778_v50 }
 0x24d   : > { %v1771_v52 = vpop.xlane.xlu0 %1770 }
 0x24e   : > { %5791 = vpow2.f32 %v1782_v51  ;;  %v1779_v53 = vsub.f32 %v1611_v38, %v1771_v52 }
 0x250   : > { %v1784_v54 = vmul.f32 1.442695, %v1779_v53 }
 0x252   : > { %5793 = vpow2.f32 %v1784_v54 }
 0x254   : > { %v1774_v55 = vpop.xlane.xlu1 %1773 }
 0x255   : > { %v1780_v56 = vsub.f32 %v1687_v43, %v1774_v55 }
 0x257   : > { %v1786_v57 = vmul.f32 1.442695, %v1780_v56 }
 0x258   : > { %v1777_v58 = vpop.xlane.xlu1 %1776 }
 0x259   : > { %5795 = vpow2.f32 %v1786_v57  ;;  %v1781_v59 = vsub.f32 %v1763_v46, %v1777_v58 }
 0x25b   : > { %v5792_v60 = vpop.eup %5791  ;;  %v1788_v61 = vmul.f32 1.442695, %v1781_v59 }
 0x25c   : > { %v1790_v62 = vsel %vm1461_vm2, %v5792_v60, 0.0 }
 0x25d   : > { %5797 = vpow2.f32 %v1788_v61  ;;  %1791 = vadd.xlane.f32.xlu0 %v1790_v62  ;;  %v2449_v61 = vld [vmem:[%s6968_s8 + $0x8] sm:$0xff]  ;;  %v2448_v62 = vld [vmem:[%s6968_s8] sm:$0xff] }
 0x25f   : > { %v5794_v63 = vpop.eup %5793 }
 0x260   : > { %v1793_v0 = vsel %vm1461_vm2, %v5794_v63, 0.0 }
 0x261   : > { %1794 = vadd.xlane.f32.xlu1 %v1793_v0 }
 0x266   : > { %v5796_v1 = vpop.eup %5795 }
 0x267   : > { %v1796_v3 = vsel %vm1461_vm2, %v5796_v1, 0.0 }
 0x268   : > { %1797 = vadd.xlane.f32.xlu0 %v1796_v3 }
 0x26a   : > { %v5798_v4 = vpop.eup %5797 }
 0x26b   : > { %v1799_v5 = vsel %vm1461_vm2, %v5798_v4, 0.0 }
 0x26c   : > { %1800 = vadd.xlane.f32.xlu1 %v1799_v5 }
 0x2e6   : > { %v1792_v6 = vpop.xlane.xlu0 %1791 }
 0x2e7   : > { %5799 = vrcp.f32 %v1792_v6  ;;  %v4967_v6 = vld [vmem:[%s6967_s7] ss:$0 sm:$0xff] }
 0x2ea   : > { %v1795_v7 = vpop.xlane.xlu1 %1794 }
 0x2eb   : > { %5801 = vrcp.f32 %v1795_v7 }
 0x2f1   : > { %v1798_v8 = vpop.xlane.xlu0 %1797 }
 0x2f2   : > { %5803 = vrcp.f32 %v1798_v8 }
 0x2f4   : > { %v5800_v11 = vpop.eup %5799 }
 0x2f5   : > { %v1801_v12 = vpop.xlane.xlu1 %1800  ;;  %v1810_v13 = vmul.f32 %v5800_v11, %v5792_v60  ;;  %v2451_v60 = vld [vmem:[%s6968_s8 + $0x18] sm:$0xff]  ;;  %v2543_v11 = vld [vmem:[%s6970_s10 + $0x30] sm:$0xff] }
 0x2f6   : > { %5805 = vrcp.f32 %v1801_v12  ;;  %v2542_v12 = vld [vmem:[%s6970_s10 + $0x28] sm:$0xff] }
 0x2f7   : > { %5461 = vmatmul.mubr.msk.f32.vlgmr.msra.gmra.mxu0 %vm1461_vm2, %v1810_v13  ;;  %v2541_v13 = vld [vmem:[%s6970_s10 + $0x20] sm:$0xff] }
 0x2f8   : > { %v5802_v16 = vpop.eup %5801  ;;  %5469 = vmatpush3.msra.mxu0 %v1382_v14  ;;  %5470 = vmatprep.mubr.msk.f32.mxu0 %vm5898_vm1, %v5897_v2  ;;  %v2540_v14 = vld [vmem:[%s6970_s10 + $0x18] sm:$0xff] }
 0x2f9   : > { %v1811_v17 = vmul.f32 %v5802_v16, %v5794_v63  ;;  %5478 = vmatprep.subr.mxu0 %v5897_v2  ;;  %v2538_v16 = vld [vmem:[%s6970_s10 + $0x8] sm:$0xff] }
 0x2fb   : > { %5466 = vmatmul.mubr.msk.f32.vlgmr.msra.gmra.mxu1 %vm1461_vm2, %v1811_v17  ;;  %v2537_v17 = vld [vmem:[%s6970_s10] sm:$0xff] }
 0x2fc   : > { %5474 = vmatpush3.msra.mxu1 %v1452_v18  ;;  %5475 = vmatprep.mubr.msk.f32.mxu1 %vm5898_vm1, %v5897_v2  ;;  %v4968_v18 = vld [vmem:[%s6969_s9] ss:$0 sm:$0xff] }
 0x2fd   : > { %5483 = vmatprep.subr.mxu1 %v5897_v2 }
 0x2ff   : > { %v5804_v19 = vpop.eup %5803 }
 0x300   : > { %v1812_v20 = vmul.f32 %v5804_v19, %v5796_v1 }
 0x302   : > { %5471 = vmatmul.mubr.msk.f32.vlgmr.msra.gmra.mxu0 %vm1461_vm2, %v1812_v20 }
 0x303   : > { %v5806_v21 = vpop.eup %5805  ;;  %5480 = vmatprep.mubr.msk.f32.mxu0 %vm5898_vm1, %v5897_v2  ;;  %5479 = vmatpush3.msra.mxu0 %v2106_v23 }
 0x304   : > { %v1813_v22 = vmul.f32 %v5806_v21, %v5798_v4  ;;  %5488 = vmatprep.subr.mxu0 %v5897_v2  ;;  %v4966_v4 = vld [vmem:[%s6966_s6] ss:$0 sm:$0xff] }
 0x306   : > { %5476 = vmatmul.mubr.msk.f32.vlgmr.msra.gmra.mxu1 %vm1461_vm2, %v1813_v22 }
 0x307   : > { %5485 = vmatprep.mubr.msk.f32.mxu1 %vm5898_vm1, %v5897_v2  ;;  %5484 = vmatpush3.msra.mxu1 %v2107_v24 }
 0x308   : > { %5493 = vmatprep.subr.mxu1 %v5897_v2 }
 0x3b7   : > { %v1883_v26 = vpop.f32.mrf.mxu0 }
 0x3b8   : > { %5481 = vmatmul.mubr.msk.f32.vlgmr.msra.gmra.mxu0 %vm1461_vm2, %v1883_v26 }
 0x3b9   : > { %v5462_v27 = vpop.f32.mrf.mxu0  ;;  %5489 = vmatpush3.msra.mxu0 %v2108_v25  ;;  %5490 = vmatprep.mubr.msk.f32.mxu0 %vm5898_vm1, %v5897_v2 }
 0x3ba   : > { %5498 = vmatprep.subr.mxu0 %v5897_v2  ;;  %v4970_v27 = vld [vmem:[%s6971_s11] ss:$0 sm:$0xff] }
 0x3bb   : > { %v1956_v29 = vpop.f32.mrf.mxu1 }
 0x3bc   : > { %5486 = vmatmul.mubr.msk.f32.vlgmr.msra.gmra.mxu1 %vm1461_vm2, %v1956_v29 }
 0x3bd   : > { %v5467_v30 = vpop.f32.mrf.mxu1  ;;  %5494 = vmatpush3.msra.mxu1 %v2109_v28  ;;  %5495 = vmatprep.mubr.msk.f32.mxu1 %vm5898_vm1, %v5897_v2 }
 0x3be   : > { %5509 = vmatprep.subr.mxu1 %v5897_v2 }
 0x3c2   : > { %v2029_v31 = vpop.f32.mrf.mxu0 }
 0x3c3   : > { %5491 = vmatmul.mubr.msk.f32.vlgmr.msra.gmra.mxu0 %vm1461_vm2, %v2029_v31 }
 0x3c4   : > { %v5472_v33 = vpop.f32.mrf.mxu0  ;;  %5506 = vmatprep.mubr.msk.f32.mxu0 %vm5898_vm1, %v5897_v2  ;;  %5499 = vmatpush3.msra.mxu0 %v2451_v60  ;;  %v4979_v60 = vld [vmem:[%s6986_s2 + $0x1a8] sm:$0xff] }
 0x3c5   : > { %5500 = vmatprep.subr.mxu0 %v5897_v2 }
 0x3c6   : > { %v2102_v34 = vpop.f32.mrf.mxu1 }
 0x3c7   : > { %5496 = vmatmul.mubr.msk.f32.vlgmr.msra.gmra.mxu1 %vm1461_vm2, %v2102_v34 }
 0x3c8   : > { %v5477_v35 = vpop.f32.mrf.mxu1  ;;  %5525 = vmatprep.mubr.msk.f32.mxu1 %vm5898_vm1, %v5897_v2  ;;  %5510 = vmatpush3.msra.mxu1 %v2544_v10  ;;  %v5009_v10 = vld [vmem:[%s6986_s2 + $0x298] sm:$0xff] }
 0x3c9   : > { %5511 = vmatprep.subr.mxu1 %v5897_v2 }
 0x3ca   : > { %5512 = vmatpush3.msra.mxu1 %v2543_v11  ;;  %v4996_v11 = vld [vmem:[%s6986_s2 + $0x230] sm:$0xff] }
 0x3cb   : > { %5513 = vmatprep.subr.mxu1 %v5897_v2 }
 0x3cc   : > { %5514 = vmatpush3.msra.mxu1 %v2542_v12  ;;  %v5008_v12 = vld [vmem:[%s6986_s2 + $0x290] sm:$0xff] }
 0x3cd   : > { %5515 = vmatprep.subr.mxu1 %v5897_v2 }
 0x3ce   : > { %5516 = vmatpush3.msra.mxu1 %v2541_v13  ;;  %v4995_v13 = vld [vmem:[%s6986_s2 + $0x228] sm:$0xff] }
 0x3cf   : > { %5517 = vmatprep.subr.mxu1 %v5897_v2 }
 0x3d0   : > { %5518 = vmatpush3.msra.mxu1 %v2540_v14  ;;  %v5007_v14 = vld [vmem:[%s6986_s2 + $0x288] sm:$0xff] }
 0x3d1   : > { %5519 = vmatprep.subr.mxu1 %v5897_v2 }
 0x3d2   : > { %5520 = vmatpush3.msra.mxu1 %v2539_v15  ;;  %v4994_v15 = vld [vmem:[%s6986_s2 + $0x220] sm:$0xff] }
 0x3d3   : > { %5521 = vmatprep.subr.mxu1 %v5897_v2 }
 0x3d4   : > { %5522 = vmatpush3.msra.mxu1 %v2538_v16  ;;  %v5006_v16 = vld [vmem:[%s6986_s2 + $0x280] sm:$0xff] }
 0x3d5   : > { %5523 = vmatprep.subr.mxu1 %v5897_v2 }
 0x3d6   : > { %5524 = vmatpush3.msra.mxu1 %v2537_v17  ;;  %v5005_v17 = vld [vmem:[%s6986_s2 + $0x278] sm:$0xff] }
 0x3d7   : > { %5550 = vmatprep.subr.mxu1 %v5897_v2 }
 0x478   : > { %v2179_v36 = vpop.f32.mrf.mxu0 }
 0x479   : > { %v2402_v42 = vsel %vm563_vm0, %v2179_v36, 0.0 }
 0x47a   : > { %v5482_v37 = vpop.f32.mrf.mxu0 }
 0x47c   : > { %v2252_v38 = vpop.f32.mrf.mxu1 }
 0x47d   : > { %v2403_v40 = vsel %vm563_vm0, %v2252_v38, 0.0 }
 0x47e   : > { %v5487_v39 = vpop.f32.mrf.mxu1  ;;  %v2404_v44 = vadd.f32 %v2403_v40, %v2402_v42  ;;  %v4985_v40 = vld [vmem:[%s6986_s2 + $0x1d8] sm:$0xff]  ;;  %v4984_v42 = vld [vmem:[%s6986_s2 + $0x1d0] sm:$0xff] }
 0x47f   : > { %v4977_v39 = vld [vmem:[%s6986_s2 + $0x198] sm:$0xff] }
 0x483   : > { %v2325_v41 = vpop.f32.mrf.mxu0 }
 0x484   : > { %v2405_v43 = vsel %vm563_vm0, %v2325_v41, 0.0  ;;  %v4976_v41 = vld [vmem:[%s6986_s2 + $0x190] sm:$0xff] }
 0x485   : > { %v5492_v45 = vpop.f32.mrf.mxu0  ;;  %v2406_v46 = vadd.f32 %v2405_v43, %v2404_v44  ;;  %v4975_v43 = vld [vmem:[%s6986_s2 + $0x188] sm:$0xff] }
 0x486   : > { %v4983_v44 = vld [vmem:[%s6986_s2 + $0x1c8] sm:$0xff]  ;;  %v4974_v45 = vld [vmem:[%s6986_s2 + $0x180] sm:$0xff] }
 0x487   : > { %v2398_v47 = vpop.f32.mrf.mxu1 }
 0x488   : > { %v2407_v48 = vsel %vm563_vm0, %v2398_v47, 0.0 }
 0x489   : > { %v2408_v50 = vadd.f32 %v2407_v48, %v2406_v46  ;;  %v5497_v51 = vpop.f32.mrf.mxu1  ;;  %v4982_v46 = vld [vmem:[%s6986_s2 + $0x1c0] sm:$0xff] }
 0x48a   : > { %v4972_v51 = vld [vmem:[%s6972_s12] ss:$0 sm:$0xff] }
 0x48b   : > { %v2416_v52 = vadd.f32 %v4965_v49, %v2408_v50 }
 0x48d   : > { %v2417_v53 = vadd.f32 %v2416_v52, %v6061_v9  ;;  %v2450_v9 = vld [vmem:[%s6968_s8 + $0x10] sm:$0xff] }
 0x48e   : > { %5501 = vmatpush3.msra.mxu0 %v2450_v9  ;;  %v4991_v9 = vld [vmem:[%s6986_s2 + $0x208] sm:$0xff] }
 0x48f   : > { %v2420_v54 = vsel %vm563_vm0, %v2417_v53, 0.0  ;;  %5502 = vmatprep.subr.mxu0 %v5897_v2 }
 0x490   : > { %2421 = vadd.xlane.f32.xlu0 %v2420_v54  ;;  %5503 = vmatpush3.msra.mxu0 %v2449_v61  ;;  %v4978_v61 = vld [vmem:[%s6986_s2 + $0x1a0] sm:$0xff] }
 0x491   : > { %5504 = vmatprep.subr.mxu0 %v5897_v2 }
 0x492   : > { %5505 = vmatpush3.msra.mxu0 %v2448_v62  ;;  %v4990_v62 = vld [vmem:[%s6986_s2 + $0x200] sm:$0xff] }
 0x493   : > { %5528 = vmatprep.subr.mxu0 %v5897_v2 }
 0x519   : > { %v2422_v55 = vpop.xlane.xlu0 %2421 }
 0x51a   : > { %v2424_v56 = vmul.f32 0.03125, %v2422_v55 }
 0x51c   : > { %v2425_v57 = vsub.f32 %v2417_v53, %v2424_v56  ;;  %v4973_v53 = vld [vmem:[%s6973_s13] ss:$0 sm:$0xff]  ;;  %v4981_v56 = vld [vmem:[%s6986_s2 + $0x1b8] sm:$0xff] }
 0x51e   : > { %v2426_v58 = vmul.f32 %v2425_v57, %v2425_v57 }
 0x520   : > { %v2427_v59 = vsel %vm563_vm0, %v2426_v58, 0.0  ;;  %v4980_v58 = vld [vmem:[%s6986_s2 + $0x1b0] sm:$0xff] }
 0x521   : > { %2428 = vadd.xlane.f32.xlu1 %v2427_v59  ;;  %v4992_v59 = vld [vmem:[%s6986_s2 + $0x210] sm:$0xff] }
 0x5aa   : > { %v2429_v63 = vpop.xlane.xlu1 %2428 }
 0x5ab   : > { %v2430_v0 = vmul.f32 0.03125, %v2429_v63  ;;  %v4989_v63 = vld [vmem:[%s6986_s2 + $0x1f8] sm:$0xff] }
 0x5ad   : > { %v2431_v1 = vadd.f32 1e-12, %v2430_v0  ;;  %v5001_v0 = vld [vmem:[%s6986_s2 + $0x258] sm:$0xff] }
 0x5af   : > { %5807 = vrsqrt.f32 %v2431_v1  ;;  %v4988_v1 = vld [vmem:[%s6986_s2 + $0x1f0] sm:$0xff] }
 0x5bc   : > { %v5808_v3 = vpop.eup %5807 }
 0x5bd   : > { %v2433_v5 = vmul.f32 %v5808_v3, %v2425_v57  ;;  %v4993_v57 = vld [vmem:[%s6986_s2 + $0x218] sm:$0xff]  ;;  %v5000_v3 = vld [vmem:[%s6986_s2 + $0x250] sm:$0xff] }
 0x5bf   : > { %v2440_v7 = vmul.f32 %v4966_v4, %v2433_v5  ;;  %v4987_v4 = vld [vmem:[%s6986_s2 + $0x1e8] sm:$0xff] }
 0x5c0   : > { %v4999_v5 = vld [vmem:[%s6986_s2 + $0x248] sm:$0xff] }
 0x5c1   : > { %v2447_v8 = vadd.f32 %v4967_v6, %v2440_v7  ;;  %v4986_v6 = vld [vmem:[%s6986_s2 + $0x1e0] sm:$0xff] }
 0x5c2   : > { %v4998_v7 = vld [vmem:[%s6986_s2 + $0x240] sm:$0xff] }
 0x5c3   : > { %5507 = vmatmul.mubr.msk.f32.vlgmr.msra.gmra.mxu0 %vm563_vm0, %v2447_v8 }
 0x5c4   : > { %5536 = vmatprep.mubr.msk.f32.mxu0 %vm5898_vm1, %v5897_v2  ;;  %5529 = vmatpush3.msra.mxu0 %v4977_v39 }
 0x5c5   : > { %5530 = vmatprep.subr.mxu0 %v5897_v2 }
 0x5c6   : > { %5531 = vmatpush3.msra.mxu0 %v4976_v41  ;;  %v5034_v41 = vld [vmem:[%s6963_s3 + $0xc] ss:$0 sm:$0xff] }
 0x5c7   : > { %5532 = vmatprep.subr.mxu0 %v5897_v2 }
 0x5c8   : > { %5533 = vmatpush3.msra.mxu0 %v4975_v43 }
 0x5c9   : > { %5534 = vmatprep.subr.mxu0 %v5897_v2 }
 0x5ca   : > { %5535 = vmatpush3.msra.mxu0 %v4974_v45 }
 0x5cb   : > { %5539 = vmatprep.subr.mxu0 %v5897_v2 }
 0x683   : > { %v2528_v19 = vpop.f32.mrf.mxu0 }
 0x684   : > { %v2529_v20 = vadd.f32 %v4968_v18, %v2528_v19  ;;  %v5017_v18 = vld [vmem:[%s6986_s2 + $0x2d8] sm:$0xff]  ;;  %v5004_v19 = vld [vmem:[%s6986_s2 + $0x270] sm:$0xff] }
 0x685   : > { %v5508_v21 = vpop.f32.mrf.mxu0 }
 0x686   : > { %v2533_v22 = vmul.f32 0.70710677, %v2529_v20  ;;  %v2532_v24 = vmul.f32 0.5, %v2529_v20  ;;  %v5016_v20 = vld [vmem:[%s6986_s2 + $0x2d0] sm:$0xff]  ;;  %v5003_v21 = vld [vmem:[%s6986_s2 + $0x268] sm:$0xff] }
 0x688   : > { %5809 = verf.f32 %v2533_v22  ;;  %v5015_v22 = vld [vmem:[%s6986_s2 + $0x2c8] sm:$0xff] }
 0x695   : > { %v5810_v23 = vpop.eup %5809 }
 0x696   : > { %v2535_v25 = vadd.f32 1.0, %v5810_v23  ;;  %v5002_v23 = vld [vmem:[%s6986_s2 + $0x260] sm:$0xff] }
 0x698   : > { %v2536_v26 = vmul.f32 %v2535_v25, %v2532_v24  ;;  %v5014_v24 = vld [vmem:[%s6986_s2 + $0x2c0] sm:$0xff]  ;;  %v5013_v25 = vld [vmem:[%s6986_s2 + $0x2b8] sm:$0xff] }
 0x69a   : > { %5526 = vmatmul.mubr.msk.f32.vlgmr.msra.gmra.mxu1 %vm2552_vm3, %v2536_v26  ;;  %v5012_v26 = vld [vmem:[%s6986_s2 + $0x2b0] sm:$0xff] }
 0x69b   : > { %5558 = vmatprep.mubr.msk.f32.mxu1 %vm5898_vm1, %v5897_v2  ;;  %5551 = vmatpush3.msra.mxu1 %v4985_v40 }
 0x69c   : > { %5552 = vmatprep.subr.mxu1 %v5897_v2 }
 0x69d   : > { %5553 = vmatpush3.msra.mxu1 %v4984_v42 }
 0x69e   : > { %5554 = vmatprep.subr.mxu1 %v5897_v2 }
 0x69f   : > { %5555 = vmatpush3.msra.mxu1 %v4983_v44 }
 0x6a0   : > { %5556 = vmatprep.subr.mxu1 %v5897_v2 }
 0x6a1   : > { %5557 = vmatpush3.msra.mxu1 %v4982_v46  ;;  %v5044_v46 = vld [vmem:[%s6963_s3 + $0x12] ss:$0 sm:$0xff] }
 0x6a2   : > { %5572 = vmatprep.subr.mxu1 %v5897_v2 }
 0x75a   : > { %v2622_v28 = vpop.f32.mrf.mxu1 }
 0x75b   : > { %v2623_v29 = vadd.f32 %v4970_v27, %v2622_v28  ;;  %v5011_v27 = vld [vmem:[%s6986_s2 + $0x2a8] sm:$0xff]  ;;  %v5010_v28 = vld [vmem:[%s6986_s2 + $0x2a0] sm:$0xff] }
 0x75c   : > { %v5527_v30 = vpop.f32.mrf.mxu1 }
 0x75d   : > { %v2626_v31 = vadd.f32 %v2623_v29, %v2447_v8  ;;  %v4997_v8 = vld [vmem:[%s6986_s2 + $0x238] sm:$0xff]  ;;  %v5020_v30 = vld [vmem:[%s6986_s2 + $0x2f0] sm:$0xff] }
 0x75e   : > { %v5021_v29 = vld [vmem:[%s6986_s2 + $0x2f8] sm:$0xff] }
 0x75f   : > { %v2629_v33 = vsel %vm563_vm0, %v2626_v31, 0.0 }
 0x760   : > { %2630 = vadd.xlane.f32.xlu0 %v2629_v33  ;;  %v5018_v33 = vld [vmem:[%s6986_s2 + $0x2e0] sm:$0xff] }
 0x7e9   : > { %v2631_v34 = vpop.xlane.xlu0 %2630 }
 0x7ea   : > { %v2632_v35 = vmul.f32 0.03125, %v2631_v34 }
 0x7ec   : > { %v2633_v36 = vsub.f32 %v2626_v31, %v2632_v35  ;;  %v5019_v31 = vld [vmem:[%s6986_s2 + $0x2e8] sm:$0xff]  ;;  %s4837_s2 = scalar_lea.sflag [#allocation3], %s467_s21 }
 0x7ee   : > { %v2634_v37 = vmul.f32 %v2633_v36, %v2633_v36 }
 0x7f0   : > { %v2635_v38 = vsel %vm563_vm0, %v2634_v37, 0.0 }
 0x7f1   : > { %2636 = vadd.xlane.f32.xlu1 %v2635_v38  ;;  %v5042_v38 = vld [vmem:[%s6963_s3 + $0x10] ss:$0 sm:$0xff] }
 0x87a   : > { %v2637_v47 = vpop.xlane.xlu1 %2636 }
 0x87b   : > { %v2638_v48 = vmul.f32 0.03125, %v2637_v47 }
 0x87d   : > { %v2639_v49 = vadd.f32 1e-12, %v2638_v48 }
 0x87f   : > { %5811 = vrsqrt.f32 %v2639_v49  ;;  %v5036_v49 = vld [vmem:[%s6963_s3 + $0xe] ss:$0 sm:$0xff] }
 0x88c   : > { %v5812_v50 = vpop.eup %5811 }
 0x88d   : > { %v2641_v52 = vmul.f32 %v5812_v50, %v2633_v36 }
 0x88f   : > { %v2648_v54 = vmul.f32 %v4972_v51, %v2641_v52 }
 0x891   : > { %v6519_v55 = vadd.f32 %v4973_v53, %v2648_v54  ;;  %v5043_v54 = vld [vmem:[%s6963_s3 + $0x11] ss:$0 sm:$0xff] }
 0x893   : > { %5537 = vmatmul.mubr.msk.f32.vlgmr.msra.gmra.mxu0 %vm563_vm0, %v6519_v55  ;;  %5559 = vmatmul.mubr.msk.f32.vlgmr.msra.gmra.mxu1 %vm563_vm0, %v6519_v55 }
 0x894   : > { %5540 = vmatpush3.msra.mxu0 %v4981_v56  ;;  %5573 = vmatpush3.msra.mxu1 %v4993_v57  ;;  %v5050_v56 = vld [vmem:[%s6963_s3 + $0x14] ss:$0 sm:$0xff] }
 0x895   : > { %5541 = vmatprep.subr.mxu0 %v5897_v2  ;;  %5574 = vmatprep.subr.mxu1 %v5897_v2 }
 0x896   : > { %5542 = vmatpush3.msra.mxu0 %v4980_v58  ;;  %5575 = vmatpush3.msra.mxu1 %v4992_v59  ;;  %v5035_v58 = vld [vmem:[%s6963_s3 + $0xd] ss:$0 sm:$0xff] }
 0x897   : > { %5543 = vmatprep.subr.mxu0 %v5897_v2  ;;  %5576 = vmatprep.subr.mxu1 %v5897_v2 }
 0x898   : > { %5544 = vmatpush3.msra.mxu0 %v4979_v60  ;;  %5577 = vmatpush3.msra.mxu1 %v4991_v9 }
 0x899   : > { %5545 = vmatprep.subr.mxu0 %v5897_v2  ;;  %5578 = vmatprep.subr.mxu1 %v5897_v2 }
 0x89a   : > { %5546 = vmatpush3.msra.mxu0 %v4978_v61  ;;  %5547 = vmatprep.mubr.msk.f32.mxu0 %vm5898_vm1, %v5897_v2 }
 0x89b   : > { %5579 = vmatpush3.msra.mxu1 %v4990_v62  ;;  %5580 = vmatprep.mubr.msk.f32.mxu1 %vm5898_vm1, %v5897_v2 }
 0x89c   : > { %5548 = vmatmul.mubr.msk.f32.vlgmr.msra.gmra.mxu0 %vm563_vm0, %v6519_v55  ;;  %5561 = vmatprep.subr.mxu0 %v5897_v2 }
 0x89d   : > { %5581 = vmatmul.mubr.msk.f32.vlgmr.msra.gmra.mxu1 %vm563_vm0, %v6519_v55  ;;  %5594 = vmatprep.subr.mxu1 %v5897_v2 }
 0x89e   : > { %5562 = vmatpush3.msra.mxu0 %v4989_v63  ;;  %5595 = vmatpush3.msra.mxu1 %v5001_v0  ;;  %v5045_v0 = vld [vmem:[%s6963_s3 + $0x13] ss:$0 sm:$0xff] }
 0x89f   : > { %5563 = vmatprep.subr.mxu0 %v5897_v2  ;;  %5596 = vmatprep.subr.mxu1 %v5897_v2 }
 0x8a0   : > { %5564 = vmatpush3.msra.mxu0 %v4988_v1  ;;  %5597 = vmatpush3.msra.mxu1 %v5000_v3  ;;  %v5037_v3 = vld [vmem:[%s6963_s3 + $0xf] ss:$0 sm:$0xff] }
 0x8a1   : > { %5565 = vmatprep.subr.mxu0 %v5897_v2  ;;  %5598 = vmatprep.subr.mxu1 %v5897_v2 }
 0x8a2   : > { %5566 = vmatpush3.msra.mxu0 %v4987_v4  ;;  %5599 = vmatpush3.msra.mxu1 %v4999_v5 }
 0x8a3   : > { %5567 = vmatprep.subr.mxu0 %v5897_v2  ;;  %5600 = vmatprep.subr.mxu1 %v5897_v2 }
 0x8a4   : > { %5568 = vmatpush3.msra.mxu0 %v4986_v6  ;;  %5569 = vmatprep.mubr.msk.f32.mxu0 %vm5898_vm1, %v5897_v2 }
 0x8a5   : > { %5601 = vmatpush3.msra.mxu1 %v4998_v7  ;;  %5602 = vmatprep.mubr.msk.f32.mxu1 %vm5898_vm1, %v5897_v2 }
 0x8a6   : > { %5570 = vmatmul.mubr.msk.f32.vlgmr.msra.gmra.mxu0 %vm563_vm0, %v6519_v55  ;;  %5583 = vmatprep.subr.mxu0 %v5897_v2 }
 0x8a7   : > { %5603 = vmatmul.mubr.msk.f32.vlgmr.msra.gmra.mxu1 %vm563_vm0, %v6519_v55  ;;  %5616 = vmatprep.subr.mxu1 %v5897_v2 }
 0x8a8   : > { %5584 = vmatpush3.msra.mxu0 %v4997_v8  ;;  %5617 = vmatpush3.msra.mxu1 %v5009_v10  ;;  %v5051_v10 = vld [vmem:[%s6963_s3 + $0x15] ss:$0 sm:$0xff] }
 0x8a9   : > { %5585 = vmatprep.subr.mxu0 %v5897_v2  ;;  %5618 = vmatprep.subr.mxu1 %v5897_v2 }
 0x8aa   : > { %5586 = vmatpush3.msra.mxu0 %v4996_v11  ;;  %5619 = vmatpush3.msra.mxu1 %v5008_v12 }
 0x8ab   : > { %5587 = vmatprep.subr.mxu0 %v5897_v2  ;;  %5620 = vmatprep.subr.mxu1 %v5897_v2 }
 0x8ac   : > { %5588 = vmatpush3.msra.mxu0 %v4995_v13  ;;  %5621 = vmatpush3.msra.mxu1 %v5007_v14 }
 0x8ad   : > { %5589 = vmatprep.subr.mxu0 %v5897_v2  ;;  %5622 = vmatprep.subr.mxu1 %v5897_v2 }
 0x8ae   : > { %5590 = vmatpush3.msra.mxu0 %v4994_v15  ;;  %5591 = vmatprep.mubr.msk.f32.mxu0 %vm5898_vm1, %v5897_v2 }
 0x8af   : > { %5623 = vmatpush3.msra.mxu1 %v5006_v16  ;;  %5624 = vmatprep.mubr.msk.f32.mxu1 %vm5898_vm1, %v5897_v2 }
 0x8b0   : > { %5592 = vmatmul.mubr.msk.f32.vlgmr.msra.gmra.mxu0 %vm563_vm0, %v6519_v55  ;;  %5605 = vmatprep.subr.mxu0 %v5897_v2 }
 0x8b1   : > { %5625 = vmatmul.mubr.msk.f32.vlgmr.msra.gmra.mxu1 %vm563_vm0, %v6519_v55  ;;  %5638 = vmatprep.subr.mxu1 %v5897_v2 }
 0x8b2   : > { %5606 = vmatpush3.msra.mxu0 %v5005_v17  ;;  %5639 = vmatpush3.msra.mxu1 %v5017_v18 }
 0x8b3   : > { %5607 = vmatprep.subr.mxu0 %v5897_v2  ;;  %5640 = vmatprep.subr.mxu1 %v5897_v2 }
 0x8b4   : > { %5608 = vmatpush3.msra.mxu0 %v5004_v19  ;;  %5641 = vmatpush3.msra.mxu1 %v5016_v20 }
 0x8b5   : > { %5609 = vmatprep.subr.mxu0 %v5897_v2  ;;  %5642 = vmatprep.subr.mxu1 %v5897_v2 }
 0x8b6   : > { %5610 = vmatpush3.msra.mxu0 %v5003_v21  ;;  %5643 = vmatpush3.msra.mxu1 %v5015_v22 }
 0x8b7   : > { %5611 = vmatprep.subr.mxu0 %v5897_v2  ;;  %5644 = vmatprep.subr.mxu1 %v5897_v2 }
 0x8b8   : > { %5612 = vmatpush3.msra.mxu0 %v5002_v23  ;;  %5613 = vmatprep.mubr.msk.f32.mxu0 %vm5898_vm1, %v5897_v2 }
 0x8b9   : > { %5645 = vmatpush3.msra.mxu1 %v5014_v24  ;;  %5646 = vmatprep.mubr.msk.f32.mxu1 %vm5898_vm1, %v5897_v2 }
 0x8ba   : > { %5614 = vmatmul.mubr.msk.f32.vlgmr.msra.gmra.mxu0 %vm563_vm0, %v6519_v55  ;;  %5627 = vmatprep.subr.mxu0 %v5897_v2 }
 0x8bb   : > { %5647 = vmatmul.mubr.msk.f32.vlgmr.msra.gmra.mxu1 %vm563_vm0, %v6519_v55  ;;  %5628 = vmatpush3.msra.mxu0 %v5013_v25 }
 0x8bc   : > { %5629 = vmatprep.subr.mxu0 %v5897_v2  ;;  %5635 = vmatprep.mubr.msk.f32.mxu0 %vm5898_vm1, %v5897_v2 }
 0x8bd   : > { %5630 = vmatpush3.msra.mxu0 %v5012_v26  ;;  %5660 = vmatprep.subr.mxu1 %v5897_v2 }
 0x8be   : > { %5631 = vmatprep.subr.mxu0 %v5897_v2  ;;  %5662 = vmatprep.mubr.msk.f32.mxu1 %vm5898_vm1, %v5897_v2 }
 0x8bf   : > { %5632 = vmatpush3.msra.mxu0 %v5011_v27 }
 0x8c0   : > { %5633 = vmatprep.subr.mxu0 %v5897_v2 }
 0x8c1   : > { %5634 = vmatpush3.msra.mxu0 %v5010_v28 }
 0x8c2   : > { %5636 = vmatmul.mubr.msk.f32.vlgmr.msra.gmra.mxu0 %vm563_vm0, %v6519_v55  ;;  %5649 = vmatprep.subr.mxu0 %v5897_v2 }
 0x8c3   : > { %5650 = vmatpush3.msra.mxu0 %v5021_v29  ;;  %5657 = vmatprep.mubr.msk.f32.mxu0 %vm5898_vm1, %v5897_v2 }
 0x8c4   : > { %5651 = vmatprep.subr.mxu0 %v5897_v2 }
 0x8c5   : > { %5652 = vmatpush3.msra.mxu0 %v5020_v30 }
 0x8c6   : > { %5653 = vmatprep.subr.mxu0 %v5897_v2 }
 0x8c7   : > { %5654 = vmatpush3.msra.mxu0 %v5019_v31 }
 0x8c8   : > { %5655 = vmatprep.subr.mxu0 %v5897_v2 }
 0x8c9   : > { %5656 = vmatpush3.msra.mxu0 %v5018_v33 }
 0x8ca   : > { %5658 = vmatmul.mubr.msk.f32.vlgmr.msra.gmra.mxu0 %vm563_vm0, %v6519_v55  ;;  %5670 = vmatprep.subr.mxu0 %v5897_v2 }
 0x8cb   : > { %5672 = vmatprep.mubr.msk.f32.mxu0 %vm5898_vm1, %v5897_v2 }
 0x953   : > { %v2811_v34 = vpop.f32.mrf.mxu0  ;;  %v2951_v35 = vpop.f32.mrf.mxu1 }
 0x954   : > { %v2812_v45 = vadd.f32 %v5034_v41, %v2811_v34  ;;  %v2952_v53 = vadd.f32 %v5036_v49, %v2951_v35 }
 0x955   : > { %v5538_v36 = vpop.f32.mrf.mxu0  ;;  %v5560_v37 = vpop.f32.mrf.mxu1 }
 0x95c   : > { %v2881_v39 = vpop.f32.mrf.mxu0 }
 0x95d   : > { %v3115_v40 = vpop.f32.mrf.mxu1  ;;  %v2882_v63 = vadd.f32 %v5035_v58, %v2881_v39 }
 0x95e   : > { %v3116_v42 = vadd.f32 %v5042_v38, %v3115_v40  ;;  %v5549_v43 = vpop.f32.mrf.mxu0 }
 0x95f   : > { %v5582_v44 = vpop.f32.mrf.mxu1 }
 0x960   : > { %5661 = vmatpush3.xpose.msk.msra.mxu1 %vm1461_vm2, %v3116_v42 }
 0x961   : > { %5665 = vmatprep.subr.mxu1 %v5897_v2 }
 0x963   : > { %5663 = vmatmul.mubr.msk.f32.vlgmr.msra.gmra.mxu1 %vm1461_vm2, %v2812_v45 }
 0x964   : > { %5667 = vmatprep.mubr.msk.f32.mxu1 %vm5898_vm1, %v5897_v2 }
 0x966   : > { %v3021_v47 = vpop.f32.mrf.mxu0 }
 0x967   : > { %v3255_v48 = vpop.f32.mrf.mxu1  ;;  %v3022_v8 = vadd.f32 %v5037_v3, %v3021_v47 }
 0x968   : > { %v3256_v50 = vadd.f32 %v5044_v46, %v3255_v48  ;;  %v5571_v51 = vpop.f32.mrf.mxu0 }
 0x969   : > { %v5604_v52 = vpop.f32.mrf.mxu1 }
 0x96a   : > { %5671 = vmatpush3.xpose.msk.msra.mxu0 %vm1461_vm2, %v3256_v50 }
 0x96b   : > { %5680 = vmatprep.subr.mxu0 %v5897_v2 }
 0x96d   : > { %5673 = vmatmul.mubr.msk.f32.vlgmr.msra.gmra.mxu0 %vm1461_vm2, %v2952_v53 }
 0x96e   : > { %5682 = vmatprep.mubr.msk.f32.mxu0 %vm5898_vm1, %v5897_v2 }
 0x970   : > { %v3185_v57 = vpop.f32.mrf.mxu0 }
 0x971   : > { %v3186_v59 = vadd.f32 %v5043_v54, %v3185_v57  ;;  %v3419_v60 = vpop.f32.mrf.mxu1  ;;  %v5052_v54 = vld [vmem:[%s6963_s3 + $0x16] ss:$0 sm:$0xff] }
 0x972   : > { %v3420_v9 = vadd.f32 %v5050_v56, %v3419_v60  ;;  %v5593_v61 = vpop.f32.mrf.mxu0 }
 0x973   : > { %v5626_v62 = vpop.f32.mrf.mxu1  ;;  %5666 = vmatpush3.xpose.msk.msra.mxu1 %vm1461_vm2, %v3186_v59 }
 0x974   : > { %5681 = vmatpush3.msra.mxu0 %v3420_v9  ;;  %5675 = vmatprep.subr.mxu1 %v5897_v2  ;;  %v5053_v62 = vld [vmem:[%s6963_s3 + $0x17] ss:$0 sm:$0xff] }
 0x975   : > { %5690 = vmatprep.subr.mxu0 %v5897_v2 }
 0x976   : > { %5668 = vmatmul.mubr.msk.f32.vlgmr.msra.gmra.mxu1 %vm1461_vm2, %v2882_v63 }
 0x977   : > { %5677 = vmatprep.mubr.msk.f32.mxu1 %vm5898_vm1, %v5897_v2 }
 0x97a   : > { %v3325_v1 = vpop.f32.mrf.mxu0 }
 0x97b   : > { %v3326_v4 = vadd.f32 %v5045_v0, %v3325_v1  ;;  %v6772_v5 = vpop.f32.mrf.mxu1 }
 0x97c   : > { %v5615_v6 = vpop.f32.mrf.mxu0  ;;  %v3560_v58 = vadd.f32 %v5052_v54, %v6772_v5  ;;  %v5070_v5 = vld [vmem:[%s6964_s4 + $0x20] sm:$0xff]  ;;  %v5098_v54 = vld [vmem:[%s6970_s10 + $0x78] sm:$0xff] }
 0x97d   : > { %v5648_v7 = vpop.f32.mrf.mxu1  ;;  %5676 = vmatpush3.xpose.msk.msra.mxu1 %vm1461_vm2, %v3326_v4  ;;  %v5071_v6 = vld [vmem:[%s6964_s4 + $0x28] sm:$0xff] }
 0x97e   : > { %5685 = vmatprep.subr.mxu1 %v5897_v2  ;;  %v5072_v7 = vld [vmem:[%s6964_s4 + $0x30] sm:$0xff] }
 0x980   : > { %5678 = vmatmul.mubr.msk.f32.vlgmr.msra.gmra.mxu1 %vm1461_vm2, %v3022_v8 }
 0x981   : > { %5687 = vmatprep.mubr.msk.f32.mxu1 %vm5898_vm1, %v5897_v2 }
 0x982   : > { %v3489_v11 = vpop.f32.mrf.mxu0 }
 0x983   : > { %v3490_v12 = vadd.f32 %v5051_v10, %v3489_v11 }
 0x984   : > { %v5637_v13 = vpop.f32.mrf.mxu0 }
 0x985   : > { %5686 = vmatpush3.msra.mxu1 %v3490_v12  ;;  %v5073_v13 = vld [vmem:[%s6964_s4 + $0x38] sm:$0xff] }
 0x986   : > { %5695 = vmatprep.subr.mxu1 %v5897_v2 }
 0x98a   : > { %v6783_v14 = vpop.f32.mrf.mxu0 }
 0x98b   : > { %v3630_v1 = vadd.f32 %v5053_v62, %v6783_v14  ;;  %v5089_v62 = vld [vmem:[%s6969_s9 + $0x1] ss:$0 sm:$0xff] }
 0x98c   : > { %v5659_v15 = vpop.f32.mrf.mxu0 }
 0xa23   : > { %v3705_v16 = vpop.f32.mrf.mxu1 }
 0xa24   : > { %v3706_v17 = vadd.f32 %v6339_v32, %v3705_v16 }
 0xa25   : > { %v5664_v18 = vpop.f32.mrf.mxu1 }
 0xa26   : > { %v3937_v19 = vsel %vm1461_vm2, %v3706_v17, -inf }
 0xa27   : > { %3938 = vmax.xlane.f32.xlu0 %v3937_v19 }
 0xa2d   : > { %v3857_v20 = vpop.f32.mrf.mxu0 }
 0xa2e   : > { %v3858_v21 = vadd.f32 %v6339_v32, %v3857_v20 }
 0xa2f   : > { %v5674_v22 = vpop.f32.mrf.mxu0 }
 0xa30   : > { %v3943_v23 = vsel %vm1461_vm2, %v3858_v21, -inf }
 0xa31   : > { %3944 = vmax.xlane.f32.xlu0 %v3943_v23 }
 0xa36   : > { %v3781_v24 = vpop.f32.mrf.mxu1 }
 0xa37   : > { %v3782_v25 = vadd.f32 %v6339_v32, %v3781_v24 }
 0xa38   : > { %v5669_v26 = vpop.f32.mrf.mxu1 }
 0xa39   : > { %v3940_v27 = vsel %vm1461_vm2, %v3782_v25, -inf }
 0xa3a   : > { %3941 = vmax.xlane.f32.xlu1 %v3940_v27 }
 0xa40   : > { %v3933_v28 = vpop.f32.mrf.mxu1 }
 0xa41   : > { %v3934_v29 = vadd.f32 %v6339_v32, %v3933_v28 }
 0xa42   : > { %v5679_v30 = vpop.f32.mrf.mxu1 }
 0xa43   : > { %v3946_v31 = vsel %vm1461_vm2, %v3934_v29, -inf }
 0xa44   : > { %3947 = vmax.xlane.f32.xlu1 %v3946_v31  ;;  %v5079_v31 = vld [vmem:[%s6965_s5 + $0x1] ss:$0 sm:$0xff] }
 0xab0   : > { %v3939_v33 = vpop.xlane.xlu0 %3938 }
 0xab1   : > { %v3949_v34 = vsub.f32 %v3706_v17, %v3939_v33 }
 0xab3   : > { %v3953_v35 = vmul.f32 1.442695, %v3949_v34 }
 0xab5   : > { %5813 = vpow2.f32 %v3953_v35 }
 0xaba   : > { %v3945_v36 = vpop.xlane.xlu0 %3944 }
 0xabb   : > { %v3951_v37 = vsub.f32 %v3858_v21, %v3945_v36 }
 0xabd   : > { %v3957_v38 = vmul.f32 1.442695, %v3951_v37 }
 0xabf   : > { %5815 = vpow2.f32 %v3957_v38 }
 0xac2   : > { %v5814_v39 = vpop.eup %5813 }
 0xac3   : > { %v3942_v40 = vpop.xlane.xlu1 %3941  ;;  %v3961_v41 = vsel %vm1461_vm2, %v5814_v39, 0.0 }
 0xac4   : > { %v3950_v42 = vsub.f32 %v3782_v25, %v3942_v40  ;;  %3962 = vadd.xlane.f32.xlu0 %v3961_v41 }
 0xac6   : > { %v3955_v43 = vmul.f32 1.442695, %v3950_v42 }
 0xac8   : > { %5817 = vpow2.f32 %v3955_v43  ;;  %v5087_v43 = vld [vmem:[%s6968_s8 + $0x38] sm:$0xff] }
 0xacc   : > { %v5816_v32 = vpop.eup %5815 }
 0xacd   : > { %v3948_v44 = vpop.xlane.xlu1 %3947  ;;  %v3967_v45 = vsel %vm1461_vm2, %v5816_v32, 0.0 }
 0xace   : > { %v3952_v46 = vsub.f32 %v3934_v29, %v3948_v44  ;;  %3968 = vadd.xlane.f32.xlu0 %v3967_v45  ;;  %v5084_v44 = vld [vmem:[%s6968_s8 + $0x20] sm:$0xff] }
 0xad0   : > { %v3959_v47 = vmul.f32 1.442695, %v3952_v46 }
 0xad2   : > { %5819 = vpow2.f32 %v3959_v47 }
 0xad5   : > { %v5818_v48 = vpop.eup %5817 }
 0xad6   : > { %v3964_v49 = vsel %vm1461_vm2, %v5818_v48, 0.0 }
 0xad7   : > { %3965 = vadd.xlane.f32.xlu1 %v3964_v49  ;;  %v5082_v49 = vld [vmem:[%s6966_s6 + $0x1] ss:$0 sm:$0xff] }
 0xadf   : > { %v5820_v50 = vpop.eup %5819 }
 0xae0   : > { %v3970_v51 = vsel %vm1461_vm2, %v5820_v50, 0.0 }
 0xae1   : > { %3971 = vadd.xlane.f32.xlu1 %v3970_v51  ;;  %v5083_v51 = vld [vmem:[%s6967_s7 + $0x1] ss:$0 sm:$0xff] }
 0xb4d   : > { %v3963_v52 = vpop.xlane.xlu0 %3962 }
 0xb4e   : > { %5821 = vrcp.f32 %v3963_v52 }
 0xb57   : > { %v3969_v53 = vpop.xlane.xlu0 %3968 }
 0xb58   : > { %5823 = vrcp.f32 %v3969_v53 }
 0xb5b   : > { %v5822_v56 = vpop.eup %5821 }
 0xb5c   : > { %v3981_v57 = vmul.f32 %v5822_v56, %v5814_v39  ;;  %v5097_v56 = vld [vmem:[%s6970_s10 + $0x70] sm:$0xff] }
 0xb5e   : > { %5683 = vmatmul.mubr.msk.f32.vlgmr.msra.gmra.mxu0 %vm1461_vm2, %v3981_v57  ;;  %v5096_v57 = vld [vmem:[%s6970_s10 + $0x68] sm:$0xff] }
 0xb5f   : > { %5691 = vmatpush3.msra.mxu0 %v3560_v58  ;;  %5692 = vmatprep.mubr.msk.f32.mxu0 %vm5898_vm1, %v5897_v2  ;;  %v5095_v58 = vld [vmem:[%s6970_s10 + $0x60] sm:$0xff] }
 0xb60   : > { %v3966_v59 = vpop.xlane.xlu1 %3965  ;;  %5700 = vmatprep.subr.mxu0 %v5897_v2 }
 0xb61   : > { %5825 = vrcp.f32 %v3966_v59  ;;  %v5094_v59 = vld [vmem:[%s6970_s10 + $0x58] sm:$0xff] }
 0xb65   : > { %v5824_v60 = vpop.eup %5823 }
 0xb66   : > { %v3983_v9 = vmul.f32 %v5824_v60, %v5816_v32  ;;  %v5086_v32 = vld [vmem:[%s6968_s8 + $0x30] sm:$0xff] }
 0xb67   : > { %v5093_v60 = vld [vmem:[%s6970_s10 + $0x50] sm:$0xff] }
 0xb68   : > { %5693 = vmatmul.mubr.msk.f32.vlgmr.msra.gmra.mxu0 %vm1461_vm2, %v3983_v9  ;;  %v5092_v9 = vld [vmem:[%s6970_s10 + $0x48] sm:$0xff] }
 0xb69   : > { %5702 = vmatprep.mubr.msk.f32.mxu0 %vm5898_vm1, %v5897_v2  ;;  %5701 = vmatpush3.msra.mxu0 %v5070_v5 }
 0xb6a   : > { %v3972_v61 = vpop.xlane.xlu1 %3971  ;;  %5710 = vmatprep.subr.mxu0 %v5897_v2 }
 0xb6b   : > { %5827 = vrcp.f32 %v3972_v61  ;;  %v5091_v61 = vld [vmem:[%s6970_s10 + $0x40] sm:$0xff] }
 0xb6e   : > { %v5826_v63 = vpop.eup %5825 }
 0xb6f   : > { %v3982_v0 = vmul.f32 %v5826_v63, %v5818_v48 }
 0xb71   : > { %5688 = vmatmul.mubr.msk.f32.vlgmr.msra.gmra.mxu1 %vm1461_vm2, %v3982_v0 }
 0xb72   : > { %5696 = vmatpush3.msra.mxu1 %v3630_v1  ;;  %5697 = vmatprep.mubr.msk.f32.mxu1 %vm5898_vm1, %v5897_v2 }
 0xb73   : > { %5705 = vmatprep.subr.mxu1 %v5897_v2 }
 0xb78   : > { %v5828_v3 = vpop.eup %5827 }
 0xb79   : > { %v3984_v4 = vmul.f32 %v5828_v3, %v5820_v50 }
 0xb7b   : > { %5698 = vmatmul.mubr.msk.f32.vlgmr.msra.gmra.mxu1 %vm1461_vm2, %v3984_v4 }
 0xb7c   : > { %5707 = vmatprep.mubr.msk.f32.mxu1 %vm5898_vm1, %v5897_v2  ;;  %5706 = vmatpush3.msra.mxu1 %v5071_v6 }
 0xb7d   : > { %5715 = vmatprep.subr.mxu1 %v5897_v2 }
 0xc1e   : > { %v4054_v8 = vpop.f32.mrf.mxu0 }
 0xc1f   : > { %5703 = vmatmul.mubr.msk.f32.vlgmr.msra.gmra.mxu0 %vm1461_vm2, %v4054_v8 }
 0xc20   : > { %v5684_v10 = vpop.f32.mrf.mxu0  ;;  %5711 = vmatpush3.msra.mxu0 %v5072_v7  ;;  %5712 = vmatprep.mubr.msk.f32.mxu0 %vm5898_vm1, %v5897_v2 }
 0xc21   : > { %5720 = vmatprep.subr.mxu0 %v5897_v2 }
 0xc28   : > { %v4200_v11 = vpop.f32.mrf.mxu0 }
 0xc29   : > { %5713 = vmatmul.mubr.msk.f32.vlgmr.msra.gmra.mxu0 %vm1461_vm2, %v4200_v11 }
 0xc2a   : > { %v5694_v12 = vpop.f32.mrf.mxu0  ;;  %5728 = vmatprep.mubr.msk.f32.mxu0 %vm5898_vm1, %v5897_v2  ;;  %5721 = vmatpush3.msra.mxu0 %v5087_v43 }
 0xc2b   : > { %5722 = vmatprep.subr.mxu0 %v5897_v2 }
 0xc2c   : > { %5723 = vmatpush3.msra.mxu0 %v5086_v32 }
 0xc2d   : > { %5724 = vmatprep.subr.mxu0 %v5897_v2 }
 0xc31   : > { %v4127_v14 = vpop.f32.mrf.mxu1 }
 0xc32   : > { %5708 = vmatmul.mubr.msk.f32.vlgmr.msra.gmra.mxu1 %vm1461_vm2, %v4127_v14 }
 0xc33   : > { %v5689_v15 = vpop.f32.mrf.mxu1  ;;  %5716 = vmatpush3.msra.mxu1 %v5073_v13  ;;  %5717 = vmatprep.mubr.msk.f32.mxu1 %vm5898_vm1, %v5897_v2 }
 0xc34   : > { %5731 = vmatprep.subr.mxu1 %v5897_v2 }
 0xc3b   : > { %v4273_v16 = vpop.f32.mrf.mxu1 }
 0xc3c   : > { %5718 = vmatmul.mubr.msk.f32.vlgmr.msra.gmra.mxu1 %vm1461_vm2, %v4273_v16 }
 0xc3d   : > { %v5699_v17 = vpop.f32.mrf.mxu1  ;;  %5747 = vmatprep.mubr.msk.f32.mxu1 %vm5898_vm1, %v5897_v2  ;;  %5732 = vmatpush3.msra.mxu1 %v5098_v54 }
 0xc3e   : > { %5733 = vmatprep.subr.mxu1 %v5897_v2 }
 0xc3f   : > { %5734 = vmatpush3.msra.mxu1 %v5097_v56 }
 0xc40   : > { %5735 = vmatprep.subr.mxu1 %v5897_v2 }
 0xc41   : > { %5736 = vmatpush3.msra.mxu1 %v5096_v57 }
 0xc42   : > { %5737 = vmatprep.subr.mxu1 %v5897_v2 }
 0xc43   : > { %5738 = vmatpush3.msra.mxu1 %v5095_v58 }
 0xc44   : > { %5739 = vmatprep.subr.mxu1 %v5897_v2 }
 0xc45   : > { %5740 = vmatpush3.msra.mxu1 %v5094_v59 }
 0xc46   : > { %5741 = vmatprep.subr.mxu1 %v5897_v2 }
 0xc47   : > { %5742 = vmatpush3.msra.mxu1 %v5093_v60 }
 0xc48   : > { %5743 = vmatprep.subr.mxu1 %v5897_v2 }
 0xc49   : > { %5744 = vmatpush3.msra.mxu1 %v5092_v9 }
 0xc4a   : > { %5745 = vmatprep.subr.mxu1 %v5897_v2 }
 0xc4b   : > { %5746 = vmatpush3.msra.mxu1 %v5091_v61 }
 0xcdf   : > { %v4351_v18 = vpop.f32.mrf.mxu0 }
 0xce0   : > { %v4574_v25 = vsel %vm563_vm0, %v4351_v18, 0.0 }
 0xce1   : > { %v5704_v19 = vpop.f32.mrf.mxu0 }
 0xce9   : > { %v4497_v20 = vpop.f32.mrf.mxu0 }
 0xcea   : > { %v4577_v27 = vsel %vm563_vm0, %v4497_v20, 0.0 }
 0xceb   : > { %v5714_v21 = vpop.f32.mrf.mxu0 }
 0xcf2   : > { %v4424_v22 = vpop.f32.mrf.mxu1 }
 0xcf3   : > { %v4575_v24 = vsel %vm563_vm0, %v4424_v22, 0.0 }
 0xcf4   : > { %v5709_v23 = vpop.f32.mrf.mxu1  ;;  %v4576_v26 = vadd.f32 %v4575_v24, %v4574_v25  ;;  %v5105_v25 = vld [vmem:[%s6973_s13 + $0x1] ss:$0 sm:$0xff] }
 0xcf5   : > { %v5104_v23 = vld [vmem:[%s6972_s12 + $0x1] ss:$0 sm:$0xff] }
 0xcf6   : > { %v4578_v29 = vadd.f32 %v4577_v27, %v4576_v26 }
 0xcfc   : > { %v4570_v28 = vpop.f32.mrf.mxu1 }
 0xcfd   : > { %v4579_v30 = vsel %vm563_vm0, %v4570_v28, 0.0 }
 0xcfe   : > { %v4580_v33 = vadd.f32 %v4579_v30, %v4578_v29  ;;  %v5719_v34 = vpop.f32.mrf.mxu1 }
 0xd00   : > { %v4589_v35 = vadd.f32 %v5079_v31, %v4580_v33 }
 0xd02   : > { %v4590_v36 = vadd.f32 %v4589_v35, %v6519_v55  ;;  %v5085_v55 = vld [vmem:[%s6968_s8 + $0x28] sm:$0xff] }
 0xd03   : > { %5725 = vmatpush3.msra.mxu0 %v5085_v55 }
 0xd04   : > { %v4595_v37 = vsel %vm563_vm0, %v4590_v36, 0.0  ;;  %5726 = vmatprep.subr.mxu0 %v5897_v2  ;;  %v5100_v2 = vld [vmem:[%s6971_s11 + $0x1] ss:$0 sm:$0xff] }
 0xd05   : > { %4596 = vadd.xlane.f32.xlu0 %v4595_v37  ;;  %5727 = vmatpush3.msra.mxu0 %v5084_v44 }
 0xd8e   : > { %v4597_v38 = vpop.xlane.xlu0 %4596 }
 0xd8f   : > { %v4598_v39 = vmul.f32 0.03125, %v4597_v38 }
 0xd91   : > { %v4599_v40 = vsub.f32 %v4590_v36, %v4598_v39 }
 0xd93   : > { %v4600_v41 = vmul.f32 %v4599_v40, %v4599_v40 }
 0xd95   : > { %v4601_v42 = vsel %vm563_vm0, %v4600_v41, 0.0 }
 0xd96   : > { %4602 = vadd.xlane.f32.xlu1 %v4601_v42 }
 0xe1f   : > { %v4603_v45 = vpop.xlane.xlu1 %4602 }
 0xe20   : > { %v4604_v46 = vmul.f32 0.03125, %v4603_v45 }
 0xe22   : > { %v4605_v47 = vadd.f32 1e-12, %v4604_v46 }
 0xe24   : > { %5829 = vrsqrt.f32 %v4605_v47 }
 0xe31   : > { %v5830_v48 = vpop.eup %5829 }
 0xe32   : > { %v4607_v50 = vmul.f32 %v5830_v48, %v4599_v40 }
 0xe34   : > { %v4614_v52 = vmul.f32 %v5082_v49, %v4607_v50 }
 0xe36   : > { %v4621_v53 = vadd.f32 %v5083_v51, %v4614_v52 }
 0xe38   : > { %5729 = vmatmul.mubr.msk.f32.vlgmr.msra.gmra.mxu0 %vm563_vm0, %v4621_v53 }
 0xef8   : > { %v4704_v63 = vpop.f32.mrf.mxu0 }
 0xef9   : > { %v4705_v0 = vadd.f32 %v5089_v62, %v4704_v63 }
 0xefa   : > { %v5730_v1 = vpop.f32.mrf.mxu0 }
 0xefb   : > { %v4709_v3 = vmul.f32 0.70710677, %v4705_v0  ;;  %v4708_v5 = vmul.f32 0.5, %v4705_v0 }
 0xefd   : > { %5831 = verf.f32 %v4709_v3 }
 0xf0a   : > { %v5832_v4 = vpop.eup %5831 }
 0xf0b   : > { %v4711_v6 = vadd.f32 1.0, %v5832_v4 }
 0xf0d   : > { %v4712_v7 = vmul.f32 %v4711_v6, %v4708_v5 }
 0xf0f   : > { %5748 = vmatmul.mubr.msk.f32.vlgmr.msra.gmra.mxu1 %vm2552_vm3, %v4712_v7 }
 0xfcf   : > { %v4799_v8 = vpop.f32.mrf.mxu1 }
 0xfd0   : > { %v4800_v10 = vadd.f32 %v5100_v2, %v4799_v8 }
 0xfd1   : > { %v5749_v11 = vpop.f32.mrf.mxu1 }
 0xfd2   : > { %v4803_v12 = vadd.f32 %v4800_v10, %v4621_v53 }
 0xfd4   : > { %v4808_v13 = vsel %vm563_vm0, %v4803_v12, 0.0 }
 0xfd5   : > { %4809 = vadd.xlane.f32.xlu0 %v4808_v13 }
0x105e   : > { %v4810_v14 = vpop.xlane.xlu0 %4809 }
0x105f   : > { %v4811_v15 = vmul.f32 0.03125, %v4810_v14 }
0x1061   : > { %v4812_v16 = vsub.f32 %v4803_v12, %v4811_v15 }
0x1063   : > { %v4813_v17 = vmul.f32 %v4812_v16, %v4812_v16 }
0x1065   : > { %v4814_v18 = vsel %vm563_vm0, %v4813_v17, 0.0 }
0x1066   : > { %4815 = vadd.xlane.f32.xlu1 %v4814_v18 }
0x10ef   : > { %v4816_v19 = vpop.xlane.xlu1 %4815 }
0x10f0   : > { %v4817_v20 = vmul.f32 0.03125, %v4816_v19 }
0x10f2   : > { %v4818_v21 = vadd.f32 1e-12, %v4817_v20 }
0x10f4   : > { %5833 = vrsqrt.f32 %v4818_v21 }
0x1101   : > { %v5834_v22 = vpop.eup %5833 }
0x1102   : > { %v4820_v24 = vmul.f32 %v5834_v22, %v4812_v16 }
0x1104   : > { %v4827_v26 = vmul.f32 %v5104_v23, %v4820_v24 }
0x1106   : > { %v4834_v27 = vadd.f32 %v5105_v25, %v4827_v26 }
0x1108   : > { %4835 = vst.msk [vmem:[%s469_s22] sm:$0xff] %vm563_vm0, %v4834_v27 }
0x1109   : > { %5848 = shalt.err (!%p5845_p3)
}
0x110a   : > { %s5849_s0 = scalar_lea.hbm %s4848_s1, 128  ;;  %s5853_s19 = scalar_lea.hbm %s6974_s14, 256 }
0x110b   : > { %p5850_p4 = scmp.ne.s32.totalorder %s4848_s1, %s5849_s0  ;;  %p5854_p9 = scmp.lt.s32.totalorder %s4848_s1, %s6974_s14 }
0x110c   : > { %p5855_p10 = scmp.lt.s32.totalorder %s5853_s19, %s5849_s0 }
0x110d   : > { %p5851_p7 = pnand %p5850_p4, %p6013_p5 }
0x110e   : > { %p5856_p11 = por %p5855_p10, %p5854_p9 }
0x110f   : > { %p5852_p8 = pneg %p5851_p7 }
0x1111   : > { %p5857_p12 = pnand %p5856_p11, %p5852_p8 }
0x1113   : > { %5860 = shalt.err (!%p5857_p12)
}
0x1114   : > { %5750 = dma.vmem_to_hbm [thread:$0]  (%p6013_p5), %s4851_s25, 128, %s4848_s1, %s4837_s2  }
0x1115 PF: > { %p5756_p13 = scmp.ge.s32.totalorder %s5895_s16, 2  ;;  %s4862_s20 = sand.u32 1, %s5883_s29  }
0x1116   : > { %s4863_s27 = scalar_lea.sflag [#allocation3], %s4862_s20 }
0x1117   : > { %p5753_p0 = pnand %p5756_p13, %p6017_p6 }
0x1119   : > { %p5754_p1 = pneg %p5753_p0 }
0x111b   : > { %5878 = dma.done.wait (%p5754_p1), %s4863_s27, 128  }
0x111c   : > { %5880 = vsyncadd (%p5754_p1), %s4863_s27, 4294967168  ;;  %s6989_s16 = sld [smem:[#allocation6_spill]]  ;;  %s6992_s29 = smov %s5887_s30 }
0x111d   : > { %s6990_s28 = sld [smem:[#allocation5_spill]] }
0x111e   : > { %s6991_s15 = sld [smem:[#allocation7_spill]] }
0x1122   : > { %p24_p2 = scmp.ge.s32.totalorder %s6989_s16, 4  }
0x1123   : > { %s6993_s30 = smov %s6990_s28 }
0x1124   :  { %26 = sbr.rel (!%p24_p2) target bundleno = 7 (0x7), region = 126 }
0x1129   :  { %4868 = vsyncpa [#allocation3], 1 }
0x112a   :  { %4870 = vsyncpa [#allocation3 + $0x1], 1 }

</bundles_post_ra>
